<compile_context>
chip_gen: v7x
topology: tpu7x:2x2x1
jax: 0.10.0
libtpu: 0.0.40
codegen_flags: <defaults>
</compile_context>

<pallas_src>
import functools

import jax
import jax.numpy as jnp
from jax.experimental import pallas as pl
from jax.experimental.pallas import tpu as pltpu

_EPS = 1e-6
_NEG_INF = -1e30
_PARAM_DTYPE = jnp.bfloat16   # weight storage / MXU operand dtype


def _vmem_limit_bytes():
    # Per-generation VMEM budget (v5e/v6e: 128 MiB, v7x: 64 MiB physical).
    cap = 64 * 1024 * 1024
    try:
        cap = getattr(pltpu.get_tpu_info(), "vmem_capacity_bytes", cap)
    except Exception:
        pass
    return min(int(cap * 0.625), 100 * 1024 * 1024)


_VMEM_LIMIT = _vmem_limit_bytes()
_TILE_BUDGET = int(_VMEM_LIMIT * 0.7)


def _bytes(dt):
    return jnp.dtype(dt).itemsize


def _tile_candidates(n, lane=128):
    """Ascending multiples of 128 that divide n; fall back to the full dim."""
    cands = [t for t in range(lane, n + 1, lane) if n % t == 0]
    return cands if cands else [n]


# ----------------------------------------------------------------------------
# Fused LayerNorm + Linear (+ optional SiLU).  x stays resident in VMEM,
# weights stream over the N grid axis (lane-dense output tiles).
# ----------------------------------------------------------------------------
def _make_ln_linear_kernel(activation):
    def kernel(x_ref, g_ref, b_ref, w_ref, bias_ref, o_ref):
        x = x_ref[...].astype(jnp.float32)
        mu = jnp.mean(x, axis=-1, keepdims=True)
        xc = x - mu
        var = jnp.mean(xc * xc, axis=-1, keepdims=True)
        n1 = xc * jax.lax.rsqrt(var + _EPS)
        n1 = n1 * g_ref[...].astype(jnp.float32) + b_ref[...].astype(jnp.float32)
        y = jnp.dot(n1.astype(w_ref.dtype), w_ref[...],
                    preferred_element_type=jnp.float32)
        y = y + bias_ref[...].astype(jnp.float32)
        if activation == "silu":
            y = y * jax.nn.sigmoid(y)
        o_ref[...] = y.astype(o_ref.dtype)
    return kernel


def ln_linear(x, gamma, beta, w, b, activation=None):
    m, k = x.shape
    n = w.shape[1]
    wb = _bytes(w.dtype)
    tn = None
    for cand in _tile_candidates(n):
        need = (2 * k * cand * wb            # double-buffered weight tiles
                + m * k * _bytes(x.dtype)    # resident activation
                + 2 * m * cand * wb          # output tiles
                + 2 * cand * wb)             # bias tiles
        if need <= _TILE_BUDGET:
            tn = cand
    if tn is None:
        tn = _tile_candidates(n)[0]
    return pl.pallas_call(
        _make_ln_linear_kernel(activation),
        out_shape=jax.ShapeDtypeStruct((m, n), w.dtype),
        grid=(n // tn,),
        in_specs=[
            pl.BlockSpec((m, k), lambda j: (0, 0)),     # x resident across N
            pl.BlockSpec((1, k), lambda j: (0, 0)),
            pl.BlockSpec((1, k), lambda j: (0, 0)),
            pl.BlockSpec((k, tn), lambda j: (0, j)),    # weight stream
            pl.BlockSpec((1, tn), lambda j: (0, j)),
        ],
        out_specs=pl.BlockSpec((m, tn), lambda j: (0, j)),
        compiler_params=pltpu.CompilerParams(
            dimension_semantics=("parallel",),
            vmem_limit_bytes=_VMEM_LIMIT),
    )(x, gamma, beta, w, b)


# ----------------------------------------------------------------------------
# Attention core on (B, S, H) layout; grid (batch, head-group).
# Bias built in-kernel from the 1-D mask; softmax in f32; bf16 MXU operands.
# ----------------------------------------------------------------------------
def _make_attention_kernel(hpg, head_dim, scale):
    def kernel(q_ref, k_ref, v_ref, mr_ref, mc_ref, o_ref):
        s = q_ref.shape[0]
        mr = mr_ref[...].astype(jnp.float32)          # (s, 1) query-row validity
        mc = mc_ref[...].astype(jnp.float32)          # (1, s) key-col validity
        valid = (mr * mc) > 0.5
        col0 = jax.lax.broadcasted_iota(jnp.int32, (s, s), 1) == 0
        bias = jnp.where(valid | col0, 0.0, _NEG_INF)
        q = q_ref[...]
        k = k_ref[...]
        v = v_ref[...]
        for h in range(hpg):
            sl = slice(h * head_dim, (h + 1) * head_dim)
            sc = jax.lax.dot_general(q[:, sl], k[:, sl],
                                     (((1,), (1,)), ((), ())),
                                     preferred_element_type=jnp.float32)
            sc = sc * scale + bias
            mmax = jnp.max(sc, axis=-1, keepdims=True)
            p = jnp.exp(sc - mmax)
            l = jnp.sum(p, axis=-1, keepdims=True)
            o = jnp.dot(p.astype(v.dtype), v[:, sl],
                        preferred_element_type=jnp.float32)
            o = o * pl.reciprocal(l, approx=True)
            o_ref[:, sl] = o.astype(o_ref.dtype)
    return kernel


def attention(q, k, v, mask_row, mask_col, num_heads, head_dim):
    bsz, s, hdim = q.shape
    # Heads per group: smallest group whose lane width is a multiple of 128
    # (1 for the real model where head_dim=128), else all heads (full-H block).
    hpg = num_heads
    for g in range(1, num_heads + 1):
        if num_heads % g == 0 and (g * head_dim) % 128 == 0:
            hpg = g
            break
    gw = hpg * head_dim
    scale = 1.0 / (head_dim ** 0.5)
    return pl.pallas_call(
        _make_attention_kernel(hpg, head_dim, scale),
        out_shape=jax.ShapeDtypeStruct((bsz, s, hdim), q.dtype),
        grid=(bsz, num_heads // hpg),
        in_specs=[
            pl.BlockSpec((None, s, gw), lambda bi, hi: (bi, 0, hi)),
            pl.BlockSpec((None, s, gw), lambda bi, hi: (bi, 0, hi)),
            pl.BlockSpec((None, s, gw), lambda bi, hi: (bi, 0, hi)),
            pl.BlockSpec((None, s, 1), lambda bi, hi: (bi, 0, 0)),
            pl.BlockSpec((None, 1, s), lambda bi, hi: (bi, 0, 0)),
        ],
        out_specs=pl.BlockSpec((None, s, gw), lambda bi, hi: (bi, 0, hi)),
        compiler_params=pltpu.CompilerParams(
            dimension_semantics=("parallel", "parallel"),
            vmem_limit_bytes=_VMEM_LIMIT),
    )(q, k, v, mask_row, mask_col)


# ----------------------------------------------------------------------------
# K-tiled projection fused with gate + residual:
#   out = residual + (x @ W + b) * gate
# Grid (batch, N, K) with K last ("arbitrary"); f32 VMEM accumulator; the
# bias/gate/residual epilogue runs only on the last K step.  Output aliases
# the residual input for an in-place residual update.
# ----------------------------------------------------------------------------
def _proj_gate_res_kernel(x_ref, w_ref, b_ref, g_ref, r_ref, o_ref, acc_ref):
    @pl.when(pl.program_id(2) == 0)
    def _():
        acc_ref[...] = jnp.zeros_like(acc_ref)

    acc_ref[...] += jnp.dot(x_ref[...].astype(w_ref.dtype), w_ref[...],
                            preferred_element_type=jnp.float32)

    @pl.when(pl.program_id(2) == pl.num_programs(2) - 1)
    def _():
        y = acc_ref[...] + b_ref[...].astype(jnp.float32)
        o_ref[...] = (r_ref[...].astype(jnp.float32)
                      + y * g_ref[...].astype(jnp.float32)).astype(o_ref.dtype)


def proj_gate_residual(x, w, b, gate, residual):
    bsz, s, k = x.shape
    n = w.shape[1]
    wb = _bytes(w.dtype)
    xb = _bytes(x.dtype)
    ob = _bytes(residual.dtype)
    best = None
    for tn in _tile_candidates(n):
        for tk in _tile_candidates(k):
            need = (2 * tk * tn * wb          # weight stream (double-buffered)
                    + 2 * s * tk * xb         # activation stream
                    + s * tn * 4              # f32 accumulator
                    + 4 * s * tn * ob         # residual + output tiles
                    + 4 * tn * wb)            # bias + gate tiles
            if need <= _TILE_BUDGET:
                if (best is None or tn * tk > best[0] * best[1]
                        or (tn * tk == best[0] * best[1] and tn > best[0])):
                    best = (tn, tk)
    if best is None:
        best = (_tile_candidates(n)[0], _tile_candidates(k)[0])
    tn, tk = best
    return pl.pallas_call(
        _proj_gate_res_kernel,
        out_shape=jax.ShapeDtypeStruct((bsz, s, n), residual.dtype),
        grid=(bsz, n // tn, k // tk),
        in_specs=[
            pl.BlockSpec((None, s, tk), lambda bi, j, kk: (bi, 0, kk)),
            pl.BlockSpec((tk, tn), lambda bi, j, kk: (kk, j)),
            pl.BlockSpec((1, tn), lambda bi, j, kk: (0, j)),
            pl.BlockSpec((None, 1, tn), lambda bi, j, kk: (bi, 0, j)),
            pl.BlockSpec((None, s, tn), lambda bi, j, kk: (bi, 0, j)),
        ],
        out_specs=pl.BlockSpec((None, s, tn), lambda bi, j, kk: (bi, 0, j)),
        scratch_shapes=[pltpu.VMEM((s, tn), jnp.float32)],
        input_output_aliases={4: 0},   # in-place residual update
        compiler_params=pltpu.CompilerParams(
            dimension_semantics=("parallel", "parallel", "arbitrary"),
            vmem_limit_bytes=_VMEM_LIMIT),
    )(x, w, b, gate, residual)


# ----------------------------------------------------------------------------
# HunyuanVideoAdaNorm for ALL layers in one call:
#   gate_msa, gate_mlp = chunk(Linear(SiLU(temb)), 2)   per layer
# Weight halves pre-split at load time; grid over (layer, N tiles).
# ----------------------------------------------------------------------------
def _adanorm_kernel(t_ref, wm_ref, wp_ref, bm_ref, bp_ref, msa_ref, mlp_ref):
    x = t_ref[...].astype(jnp.float32)
    silu = (x * jax.nn.sigmoid(x)).astype(wm_ref.dtype)   # SiLU in f32, MXU in bf16
    msa = jnp.dot(silu, wm_ref[...], preferred_element_type=jnp.float32)
    mlp = jnp.dot(silu, wp_ref[...], preferred_element_type=jnp.float32)
    msa_ref[...] = (msa + bm_ref[...].astype(jnp.float32)).astype(msa_ref.dtype)
    mlp_ref[...] = (mlp + bp_ref[...].astype(jnp.float32)).astype(mlp_ref.dtype)


def ada_norm_gates_all_layers(temb, w_msa, w_mlp, b_msa, b_mlp):
    """temb: [B, K]; w_*: [L, K, H]; b_*: [L, 1, H]. Returns ([L,B,H], [L,B,H])."""
    bsz, k = temb.shape
    nl, _, half = w_msa.shape
    wb = _bytes(w_msa.dtype)
    tn = None
    for cand in _tile_candidates(half):
        need = 4 * k * cand * wb + bsz * k * 4 + 4 * bsz * cand * 4 + 4 * cand * wb
        if need <= _TILE_BUDGET:
            tn = cand
    if tn is None:
        tn = _tile_candidates(half)[0]
    msa, mlp = pl.pallas_call(
        _adanorm_kernel,
        out_shape=(jax.ShapeDtypeStruct((nl, bsz, half), temb.dtype),
                   jax.ShapeDtypeStruct((nl, bsz, half), temb.dtype)),
        grid=(nl, half // tn),
        in_specs=[
            pl.BlockSpec((bsz, k), lambda l, j: (0, 0)),
            pl.BlockSpec((None, k, tn), lambda l, j: (l, 0, j)),
            pl.BlockSpec((None, k, tn), lambda l, j: (l, 0, j)),
            pl.BlockSpec((None, 1, tn), lambda l, j: (l, 0, j)),
            pl.BlockSpec((None, 1, tn), lambda l, j: (l, 0, j)),
        ],
        out_specs=(pl.BlockSpec((None, bsz, tn), lambda l, j: (l, 0, j)),
                   pl.BlockSpec((None, bsz, tn), lambda l, j: (l, 0, j))),
        compiler_params=pltpu.CompilerParams(
            dimension_semantics=("parallel", "parallel"),
            vmem_limit_bytes=_VMEM_LIMIT),
    )(temb, w_msa, w_mlp, b_msa, b_mlp)
    return msa, mlp


# ----------------------------------------------------------------------------
# Refiner block + full refiner forward
# ----------------------------------------------------------------------------
def _refiner_block(hs, gate_msa, gate_mlp, mask_row, mask_col, p,
                   num_heads, head_dim):
    bsz, s, hdim = hs.shape
    x2d = hs.reshape(bsz * s, hdim)

    # Fused LN(norm1) + QKV projection (single weight stream, bf16 output).
    qkv = ln_linear(x2d, p["norm1_g"], p["norm1_b"], p["qkv_w"], p["qkv_b"])
    q = qkv[:, :hdim].reshape(bsz, s, hdim)
    k = qkv[:, hdim:2 * hdim].reshape(bsz, s, hdim)
    v = qkv[:, 2 * hdim:].reshape(bsz, s, hdim)

    ctx = attention(q, k, v, mask_row, mask_col, num_heads, head_dim)

    # h = h + out_proj(ctx) * gate_msa   (K-tiled matmul + gate + residual)
    hs = proj_gate_residual(ctx, p["o_w"], p["o_b"], gate_msa, hs)

    # Fused LN(norm2) + FF1 + SiLU.
    ff1 = ln_linear(hs.reshape(bsz * s, hdim), p["norm2_g"], p["norm2_b"],
                    p["ff1_w"], p["ff1_b"], activation="silu")

    # h = h + FF2(ff1) * gate_mlp        (K-tiled matmul + gate + residual)
    hs = proj_gate_residual(ff1.reshape(bsz, s, -1), p["ff2_w"], p["ff2_b"],
                            gate_mlp, hs)
    return hs
    # TODO(synk): mlp_drop_rate / attention dropout are 0.0 in this module;
    # no dropout kernel is implemented.


@functools.partial(jax.jit, static_argnames=("num_heads", "head_dim"))
def hunyuan_video_individual_token_refiner(hidden_states, temb, attention_mask,
                                           params, ada_params, *,
                                           num_heads, head_dim):
    bsz, s, _ = hidden_states.shape
    if attention_mask is None:
        mask = jnp.ones((bsz, s), jnp.float32)
    else:
        mask = attention_mask.astype(jnp.float32)
    mask_row = mask[:, :, None]   # (B, S, 1) — query-row validity
    mask_col = mask[:, None, :]   # (B, 1, S) — key-col validity

    # All layers' AdaNorm gates in one batched call (depend only on temb).
    gates_msa, gates_mlp = ada_norm_gates_all_layers(
        temb, ada_params["w_msa"], ada_params["w_mlp"],
        ada_params["b_msa"], ada_params["b_mlp"])

    hs = hidden_states
    for l, p in enumerate(params):
        gm = gates_msa[l][:, None, :]
        gp = gates_mlp[l][:, None, :]
        hs = _refiner_block(hs, gm, gp, mask_row, mask_col, p,
                            num_heads, head_dim)
    return hs


# ----------------------------------------------------------------------------
# Parameters: PyTorch [out, in] weights transposed / concatenated / split ONCE
# at load time and stored in bf16.  Pure-JAX f32 reference for verification.
# ----------------------------------------------------------------------------
def _linear_params(kw, kb, in_f, out_f, w_scale=0.1, b_scale=0.02):
    w_torch = jax.random.normal(kw, (out_f, in_f), jnp.float32) * w_scale
    b = jax.random.normal(kb, (out_f,), jnp.float32) * b_scale
    return (jnp.transpose(w_torch).astype(_PARAM_DTYPE),
            b.reshape(1, out_f).astype(_PARAM_DTYPE))


def _init_block_params(key, hidden, mlp_ratio=4.0):
    inner = int(hidden * mlp_ratio)
    ks = jax.random.split(key, 14)
    qw, qb = _linear_params(ks[0], ks[1], hidden, hidden)
    kw_, kb_ = _linear_params(ks[2], ks[3], hidden, hidden)
    vw, vb = _linear_params(ks[4], ks[5], hidden, hidden)
    ow, ob = _linear_params(ks[6], ks[7], hidden, hidden)
    f1w, f1b = _linear_params(ks[8], ks[9], hidden, inner)
    f2w, f2b = _linear_params(ks[10], ks[11], inner, hidden)
    aw, ab = _linear_params(ks[12], ks[13], hidden, 2 * hidden)
    return {
        "norm1_g": jnp.ones((1, hidden), jnp.float32),
        "norm1_b": jnp.zeros((1, hidden), jnp.float32),
        "qkv_w": jnp.concatenate([qw, kw_, vw], axis=1),   # [H, 3H], one-time
        "qkv_b": jnp.concatenate([qb, kb_, vb], axis=1),
        "o_w": ow, "o_b": ob,
        "norm2_g": jnp.ones((1, hidden), jnp.float32),
        "norm2_b": jnp.zeros((1, hidden), jnp.float32),
        "ff1_w": f1w, "ff1_b": f1b,
        "ff2_w": f2w, "ff2_b": f2b,
        # AdaNorm halves (chunk(2, dim=1) == column halves of [in, out]).
        "ada_w_msa": aw[:, :hidden], "ada_w_mlp": aw[:, hidden:],
        "ada_b_msa": ab[:, :hidden], "ada_b_mlp": ab[:, hidden:],
    }


def _stack_ada_params(block_params):
    return {
        "w_msa": jnp.stack([p["ada_w_msa"] for p in block_params]),
        "w_mlp": jnp.stack([p["ada_w_mlp"] for p in block_params]),
        "b_msa": jnp.stack([p["ada_b_msa"] for p in block_params]),
        "b_mlp": jnp.stack([p["ada_b_mlp"] for p in block_params]),
    }


def _reference_forward(hidden_states, temb, attention_mask, params,
                       num_heads, head_dim):
    f32 = jnp.float32
    hi = jax.lax.Precision.HIGHEST
    bsz, s, hdim = hidden_states.shape

    m = attention_mask.astype(bool)
    sm = m[:, None, None, :] & m[:, None, :, None]
    sm = sm.at[:, :, :, 0].set(True)

    def ln(x, g, b):
        mu = jnp.mean(x, -1, keepdims=True)
        var = jnp.mean((x - mu) ** 2, -1, keepdims=True)
        return (x - mu) / jnp.sqrt(var + _EPS) * g.astype(f32) + b.astype(f32)

    def lin(x, w, b):
        return jnp.einsum("...k,kn->...n", x, w.astype(f32),
                          precision=hi) + b.astype(f32)

    x = hidden_states.astype(f32)
    t = temb.astype(f32)
    scale = 1.0 / (head_dim ** 0.5)
    for p in params:
        n1 = ln(x, p["norm1_g"], p["norm1_b"])
        qkv = lin(n1, p["qkv_w"], p["qkv_b"])
        q, k, v = jnp.split(qkv, 3, axis=-1)

        def heads(z):
            return z.reshape(bsz, s, num_heads, head_dim).transpose(0, 2, 1, 3)

        q, k, v = heads(q), heads(k), heads(v)
        sc = jnp.einsum("bhqd,bhkd->bhqk", q, k, precision=hi) * scale
        sc = jnp.where(sm, sc, _NEG_INF)
        pr = jax.nn.softmax(sc, axis=-1)
        ctx = jnp.einsum("bhqk,bhkd->bhqd", pr, v, precision=hi)
        ctx = ctx.transpose(0, 2, 1, 3).reshape(bsz, s, hdim)
        attn_out = lin(ctx, p["o_w"], p["o_b"])

        silu_t = t * jax.nn.sigmoid(t)
        gm = lin(silu_t, p["ada_w_msa"], p["ada_b_msa"])[:, None, :]
        gp = lin(silu_t, p["ada_w_mlp"], p["ada_b_mlp"])[:, None, :]

        x = x + attn_out * gm
        n2 = ln(x, p["norm2_g"], p["norm2_b"])
        h1 = lin(n2, p["ff1_w"], p["ff1_b"])
        h1 = h1 * jax.nn.sigmoid(h1)
        ff = lin(h1, p["ff2_w"], p["ff2_b"])
        x = x + ff * gp
    return x.astype(hidden_states.dtype)


if __name__ == "__main__":
    num_heads, head_dim, num_layers = 2, 16, 2
    hidden = num_heads * head_dim            # 32
    B, S = 2, 8

    key = jax.random.PRNGKey(0)
    keys = jax.random.split(key, 2 + num_layers)
    hidden_states = jax.random.normal(keys[0], (B, S, hidden), jnp.float32)
    temb = jax.random.normal(keys[1], (B, hidden), jnp.float32)
    attention_mask = jnp.array(
        [[1, 1, 1, 1, 1, 1, 1, 1],
         [1, 1, 1, 1, 1, 0, 0, 0]], dtype=jnp.int32)

    params = tuple(_init_block_params(keys[2 + i], hidden)
                   for i in range(num_layers))
    ada_params = _stack_ada_params(params)

    out = hunyuan_video_individual_token_refiner(
        hidden_states, temb, attention_mask, params, ada_params,
        num_heads=num_heads, head_dim=head_dim)
    out = jax.block_until_ready(out)

    ref = _reference_forward(hidden_states, temb, attention_mask, params,
                             num_heads, head_dim)

    assert out.shape == (B, S, hidden)
    max_err = float(jnp.max(jnp.abs(out.astype(jnp.float32)
                                    - ref.astype(jnp.float32))))
    assert max_err < 3e-2, f"max abs err {max_err}"
    print("KERNEL_OK")
</pallas_src>

<mosaic_0001>
module attributes {stable_mosaic.version = 11 : i64} {
  func.func @_adanorm_kernel(%arg0: i32, %arg1: i32, %arg2: memref<2x32xf32, #tpu.memory_space<vmem>>, %arg3: memref<1x32x32xbf16, #tpu.memory_space<vmem>>, %arg4: memref<1x32x32xbf16, #tpu.memory_space<vmem>>, %arg5: memref<1x1x32xbf16, #tpu.memory_space<vmem>>, %arg6: memref<1x1x32xbf16, #tpu.memory_space<vmem>>, %arg7: memref<1x2x32xf32, #tpu.memory_space<vmem>>, %arg8: memref<1x2x32xf32, #tpu.memory_space<vmem>>) attributes {dimension_semantics = [#tpu.dimension_semantics<parallel>, #tpu.dimension_semantics<parallel>], iteration_bounds = array<i64: 2, 1>, scalar_prefetch = 0 : i64, scratch_operands = 0 : i64, tpu.core_type = #tpu.core_type<tc>, window_params = [{pipeline_mode = #tpu.pipeline_mode<synchronous>, transform_indices = @transform_0, window_bounds = array<i64: 2, 32>}, {transform_indices = @transform_1, window_bounds = array<i64: 1, 32, 32>}, {transform_indices = @transform_2, window_bounds = array<i64: 1, 32, 32>}, {transform_indices = @transform_3, window_bounds = array<i64: 1, 1, 32>}, {transform_indices = @transform_4, window_bounds = array<i64: 1, 1, 32>}, {transform_indices = @transform_5, window_bounds = array<i64: 1, 2, 32>}, {transform_indices = @transform_6, window_bounds = array<i64: 1, 2, 32>}]} {
    %c0 = arith.constant 0 : index
    %c0_0 = arith.constant 0 : index
    %0 = vector.load %arg2[%c0, %c0_0] : memref<2x32xf32, #tpu.memory_space<vmem>>, vector<2x32xf32>
    %1 = arith.negf %0 : vector<2x32xf32>
    %2 = math.exp %1 : vector<2x32xf32>
    %cst = arith.constant 1.000000e+00 : f32
    %3 = vector.broadcast %cst : f32 to vector<2x32xf32>
    %4 = arith.addf %3, %2 : vector<2x32xf32>
    %5 = arith.divf %3, %4 : vector<2x32xf32>
    %6 = arith.mulf %0, %5 : vector<2x32xf32>
    %7 = arith.truncf %6 : vector<2x32xf32> to vector<2x32xbf16>
    %c0_1 = arith.constant 0 : index
    %c0_2 = arith.constant 0 : index
    %c0_3 = arith.constant 0 : index
    %8 = vector.load %arg3[%c0_1, %c0_2, %c0_3] : memref<1x32x32xbf16, #tpu.memory_space<vmem>>, vector<1x32x32xbf16>
    %9 = vector.shape_cast %8 : vector<1x32x32xbf16> to vector<32x32xbf16>
    %cst_4 = arith.constant dense<0.000000e+00> : vector<2x32xf32>
    %10 = tpu.matmul %7, %9, %cst_4 {dimension_numbers = #tpu.dot_dimension_numbers<[1], [0], [0], [1], [0, 0, 1, 1], [], []>} : vector<2x32xbf16>, vector<32x32xbf16>, vector<2x32xf32> -> vector<2x32xf32>
    %c0_5 = arith.constant 0 : index
    %c0_6 = arith.constant 0 : index
    %c0_7 = arith.constant 0 : index
    %11 = vector.load %arg4[%c0_5, %c0_6, %c0_7] : memref<1x32x32xbf16, #tpu.memory_space<vmem>>, vector<1x32x32xbf16>
    %12 = vector.shape_cast %11 : vector<1x32x32xbf16> to vector<32x32xbf16>
    %cst_8 = arith.constant dense<0.000000e+00> : vector<2x32xf32>
    %13 = tpu.matmul %7, %12, %cst_8 {dimension_numbers = #tpu.dot_dimension_numbers<[1], [0], [0], [1], [0, 0, 1, 1], [], []>} : vector<2x32xbf16>, vector<32x32xbf16>, vector<2x32xf32> -> vector<2x32xf32>
    %c0_9 = arith.constant 0 : index
    %c0_10 = arith.constant 0 : index
    %c0_11 = arith.constant 0 : index
    %14 = vector.load %arg5[%c0_9, %c0_10, %c0_11] : memref<1x1x32xbf16, #tpu.memory_space<vmem>>, vector<1x1x32xbf16>
    %15 = vector.shape_cast %14 : vector<1x1x32xbf16> to vector<1x32xbf16>
    %16 = arith.extf %15 : vector<1x32xbf16> to vector<1x32xf32>
    %17 = vector.broadcast %16 : vector<1x32xf32> to vector<2x32xf32>
    %18 = arith.addf %10, %17 : vector<2x32xf32>
    %c0_12 = arith.constant 0 : index
    %c0_13 = arith.constant 0 : index
    %c0_14 = arith.constant 0 : index
    %19 = vector.load %arg7[%c0_12, %c0_13, %c0_14] : memref<1x2x32xf32, #tpu.memory_space<vmem>>, vector<1x2x32xf32>
    %20 = vector.shape_cast %19 : vector<1x2x32xf32> to vector<2x32xf32>
    %21 = vector.shape_cast %18 : vector<2x32xf32> to vector<1x2x32xf32>
    tpu.vector_store %arg7[%c0_12, %c0_13, %c0_14], %21 {strides = array<i32>} : memref<1x2x32xf32, #tpu.memory_space<vmem>>, vector<1x2x32xf32>,
    %c0_15 = arith.constant 0 : index
    %c0_16 = arith.constant 0 : index
    %c0_17 = arith.constant 0 : index
    %22 = vector.load %arg6[%c0_15, %c0_16, %c0_17] : memref<1x1x32xbf16, #tpu.memory_space<vmem>>, vector<1x1x32xbf16>
    %23 = vector.shape_cast %22 : vector<1x1x32xbf16> to vector<1x32xbf16>
    %24 = arith.extf %23 : vector<1x32xbf16> to vector<1x32xf32>
    %25 = vector.broadcast %24 : vector<1x32xf32> to vector<2x32xf32>
    %26 = arith.addf %13, %25 : vector<2x32xf32>
    %c0_18 = arith.constant 0 : index
    %c0_19 = arith.constant 0 : index
    %c0_20 = arith.constant 0 : index
    %27 = vector.load %arg8[%c0_18, %c0_19, %c0_20] : memref<1x2x32xf32, #tpu.memory_space<vmem>>, vector<1x2x32xf32>
    %28 = vector.shape_cast %27 : vector<1x2x32xf32> to vector<2x32xf32>
    %29 = vector.shape_cast %26 : vector<2x32xf32> to vector<1x2x32xf32>
    tpu.vector_store %arg8[%c0_18, %c0_19, %c0_20], %29 {strides = array<i32>} : memref<1x2x32xf32, #tpu.memory_space<vmem>>, vector<1x2x32xf32>,
    return
  }
  func.func @transform_0(%arg0: i32, %arg1: i32) -> (i32, i32) {
    %c0_i32 = arith.constant 0 : i32
    %c0_i32_0 = arith.constant 0 : i32
    %c0_i32_1 = arith.constant 0 : i32
    return %c0_i32, %c0_i32_0 : i32, i32
  }
  func.func @transform_1(%arg0: i32, %arg1: i32) -> (i32, i32, i32) {
    %c0_i32 = arith.constant 0 : i32
    %c0_i32_0 = arith.constant 0 : i32
    return %arg0, %c0_i32, %arg1 : i32, i32, i32
  }
  func.func @transform_2(%arg0: i32, %arg1: i32) -> (i32, i32, i32) {
    %c0_i32 = arith.constant 0 : i32
    %c0_i32_0 = arith.constant 0 : i32
    return %arg0, %c0_i32, %arg1 : i32, i32, i32
  }
  func.func @transform_3(%arg0: i32, %arg1: i32) -> (i32, i32, i32) {
    %c0_i32 = arith.constant 0 : i32
    %c0_i32_0 = arith.constant 0 : i32
    return %arg0, %c0_i32, %arg1 : i32, i32, i32
  }
  func.func @transform_4(%arg0: i32, %arg1: i32) -> (i32, i32, i32) {
    %c0_i32 = arith.constant 0 : i32
    %c0_i32_0 = arith.constant 0 : i32
    return %arg0, %c0_i32, %arg1 : i32, i32, i32
  }
  func.func @transform_5(%arg0: i32, %arg1: i32) -> (i32, i32, i32) {
    %c0_i32 = arith.constant 0 : i32
    %c0_i32_0 = arith.constant 0 : i32
    return %arg0, %c0_i32, %arg1 : i32, i32, i32
  }
  func.func @transform_6(%arg0: i32, %arg1: i32) -> (i32, i32, i32) {
    %c0_i32 = arith.constant 0 : i32
    %c0_i32_0 = arith.constant 0 : i32
    return %arg0, %c0_i32, %arg1 : i32, i32, i32
  }
}

module attributes {stable_mosaic.version = 11 : i64} {
  func.func @kernel(%arg0: i32, %arg1: memref<16x32xf32, #tpu.memory_space<vmem>>, %arg2: memref<1x32xf32, #tpu.memory_space<vmem>>, %arg3: memref<1x32xf32, #tpu.memory_space<vmem>>, %arg4: memref<32x96xbf16, #tpu.memory_space<vmem>>, %arg5: memref<1x96xbf16, #tpu.memory_space<vmem>>, %arg6: memref<16x96xbf16, #tpu.memory_space<vmem>>) attributes {dimension_semantics = [#tpu.dimension_semantics<parallel>], iteration_bounds = array<i64: 1>, scalar_prefetch = 0 : i64, scratch_operands = 0 : i64, tpu.core_type = #tpu.core_type<tc>, window_params = [{pipeline_mode = #tpu.pipeline_mode<synchronous>, transform_indices = @transform_0, window_bounds = array<i64: 16, 32>}, {pipeline_mode = #tpu.pipeline_mode<synchronous>, transform_indices = @transform_1, window_bounds = array<i64: 1, 32>}, {pipeline_mode = #tpu.pipeline_mode<synchronous>, transform_indices = @transform_2, window_bounds = array<i64: 1, 32>}, {transform_indices = @transform_3, window_bounds = array<i64: 32, 96>}, {transform_indices = @transform_4, window_bounds = array<i64: 1, 96>}, {transform_indices = @transform_5, window_bounds = array<i64: 16, 96>}]} {
    %c0 = arith.constant 0 : index
    %c0_0 = arith.constant 0 : index
    %0 = vector.load %arg1[%c0, %c0_0] : memref<16x32xf32, #tpu.memory_space<vmem>>, vector<16x32xf32>
    %cst = arith.constant dense<0.000000e+00> : vector<16xf32>
    %1 = vector.multi_reduction <add>, %0, %cst [1] : vector<16x32xf32> to vector<16xf32>
    %2 = vector.shape_cast %1 : vector<16xf32> to vector<16x1xf32>
    %cst_1 = arith.constant 3.200000e+01 : f32
    %3 = vector.broadcast %cst_1 : f32 to vector<16x1xf32>
    %4 = arith.divf %2, %3 : vector<16x1xf32>
    %5 = vector.broadcast %4 : vector<16x1xf32> to vector<16x32xf32>
    %6 = arith.subf %0, %5 : vector<16x32xf32>
    %7 = arith.mulf %6, %6 : vector<16x32xf32>
    %cst_2 = arith.constant dense<0.000000e+00> : vector<16xf32>
    %8 = vector.multi_reduction <add>, %7, %cst_2 [1] : vector<16x32xf32> to vector<16xf32>
    %9 = vector.shape_cast %8 : vector<16xf32> to vector<16x1xf32>
    %cst_3 = arith.constant 3.200000e+01 : f32
    %10 = vector.broadcast %cst_3 : f32 to vector<16x1xf32>
    %11 = arith.divf %9, %10 : vector<16x1xf32>
    %cst_4 = arith.constant 9.99999997E-7 : f32
    %12 = vector.broadcast %cst_4 : f32 to vector<16x1xf32>
    %13 = arith.addf %11, %12 : vector<16x1xf32>
    %14 = math.rsqrt %13 : vector<16x1xf32>
    %15 = vector.broadcast %14 : vector<16x1xf32> to vector<16x32xf32>
    %16 = arith.mulf %6, %15 : vector<16x32xf32>
    %c0_5 = arith.constant 0 : index
    %c0_6 = arith.constant 0 : index
    %17 = vector.load %arg2[%c0_5, %c0_6] : memref<1x32xf32, #tpu.memory_space<vmem>>, vector<1x32xf32>
    %18 = vector.broadcast %17 : vector<1x32xf32> to vector<16x32xf32>
    %19 = arith.mulf %16, %18 : vector<16x32xf32>
    %c0_7 = arith.constant 0 : index
    %c0_8 = arith.constant 0 : index
    %20 = vector.load %arg3[%c0_7, %c0_8] : memref<1x32xf32, #tpu.memory_space<vmem>>, vector<1x32xf32>
    %21 = vector.broadcast %20 : vector<1x32xf32> to vector<16x32xf32>
    %22 = arith.addf %19, %21 : vector<16x32xf32>
    %23 = arith.truncf %22 : vector<16x32xf32> to vector<16x32xbf16>
    %c0_9 = arith.constant 0 : index
    %c0_10 = arith.constant 0 : index
    %24 = vector.load %arg4[%c0_9, %c0_10] : memref<32x96xbf16, #tpu.memory_space<vmem>>, vector<32x96xbf16>
    %cst_11 = arith.constant dense<0.000000e+00> : vector<16x96xf32>
    %25 = tpu.matmul %23, %24, %cst_11 {dimension_numbers = #tpu.dot_dimension_numbers<[1], [0], [0], [1], [0, 0, 1, 1], [], []>} : vector<16x32xbf16>, vector<32x96xbf16>, vector<16x96xf32> -> vector<16x96xf32>
    %c0_12 = arith.constant 0 : index
    %c0_13 = arith.constant 0 : index
    %26 = vector.load %arg5[%c0_12, %c0_13] : memref<1x96xbf16, #tpu.memory_space<vmem>>, vector<1x96xbf16>
    %27 = arith.extf %26 : vector<1x96xbf16> to vector<1x96xf32>
    %28 = vector.broadcast %27 : vector<1x96xf32> to vector<16x96xf32>
    %29 = arith.addf %25, %28 : vector<16x96xf32>
    %30 = arith.truncf %29 : vector<16x96xf32> to vector<16x96xbf16>
    %c0_14 = arith.constant 0 : index
    %c0_15 = arith.constant 0 : index
    %31 = vector.load %arg6[%c0_14, %c0_15] : memref<16x96xbf16, #tpu.memory_space<vmem>>, vector<16x96xbf16>
    tpu.vector_store %arg6[%c0_14, %c0_15], %30 {strides = array<i32>} : memref<16x96xbf16, #tpu.memory_space<vmem>>, vector<16x96xbf16>,
    return
  }
  func.func @transform_0(%arg0: i32) -> (i32, i32) {
    %c0_i32 = arith.constant 0 : i32
    %c0_i32_0 = arith.constant 0 : i32
    %c0_i32_1 = arith.constant 0 : i32
    return %c0_i32, %c0_i32_0 : i32, i32
  }
  func.func @transform_1(%arg0: i32) -> (i32, i32) {
    %c0_i32 = arith.constant 0 : i32
    %c0_i32_0 = arith.constant 0 : i32
    %c0_i32_1 = arith.constant 0 : i32
    return %c0_i32, %c0_i32_0 : i32, i32
  }
  func.func @transform_2(%arg0: i32) -> (i32, i32) {
    %c0_i32 = arith.constant 0 : i32
    %c0_i32_0 = arith.constant 0 : i32
    %c0_i32_1 = arith.constant 0 : i32
    return %c0_i32, %c0_i32_0 : i32, i32
  }
  func.func @transform_3(%arg0: i32) -> (i32, i32) {
    %c0_i32 = arith.constant 0 : i32
    %c0_i32_0 = arith.constant 0 : i32
    return %c0_i32, %arg0 : i32, i32
  }
  func.func @transform_4(%arg0: i32) -> (i32, i32) {
    %c0_i32 = arith.constant 0 : i32
    %c0_i32_0 = arith.constant 0 : i32
    return %c0_i32, %arg0 : i32, i32
  }
  func.func @transform_5(%arg0: i32) -> (i32, i32) {
    %c0_i32 = arith.constant 0 : i32
    %c0_i32_0 = arith.constant 0 : i32
    return %c0_i32, %arg0 : i32, i32
  }
}

module attributes {stable_mosaic.version = 11 : i64} {
  func.func @kernel(%arg0: i32, %arg1: i32, %arg2: memref<1x8x32xbf16, #tpu.memory_space<vmem>>, %arg3: memref<1x8x32xbf16, #tpu.memory_space<vmem>>, %arg4: memref<1x8x32xbf16, #tpu.memory_space<vmem>>, %arg5: memref<1x8x1xf32, #tpu.memory_space<vmem>>, %arg6: memref<1x1x8xf32, #tpu.memory_space<vmem>>, %arg7: memref<1x8x32xbf16, #tpu.memory_space<vmem>>) attributes {dimension_semantics = [#tpu.dimension_semantics<parallel>, #tpu.dimension_semantics<parallel>], iteration_bounds = array<i64: 2, 1>, scalar_prefetch = 0 : i64, scratch_operands = 0 : i64, tpu.core_type = #tpu.core_type<tc>, window_params = [{transform_indices = @transform_0, window_bounds = array<i64: 1, 8, 32>}, {transform_indices = @transform_1, window_bounds = array<i64: 1, 8, 32>}, {transform_indices = @transform_2, window_bounds = array<i64: 1, 8, 32>}, {transform_indices = @transform_3, window_bounds = array<i64: 1, 8, 1>}, {transform_indices = @transform_4, window_bounds = array<i64: 1, 1, 8>}, {transform_indices = @transform_5, window_bounds = array<i64: 1, 8, 32>}]} {
    %c0 = arith.constant 0 : index
    %c0_0 = arith.constant 0 : index
    %c0_1 = arith.constant 0 : index
    %0 = vector.load %arg5[%c0, %c0_0, %c0_1] : memref<1x8x1xf32, #tpu.memory_space<vmem>>, vector<1x8x1xf32>
    %1 = vector.shape_cast %0 : vector<1x8x1xf32> to vector<8x1xf32>
    %c0_2 = arith.constant 0 : index
    %c0_3 = arith.constant 0 : index
    %c0_4 = arith.constant 0 : index
    %2 = vector.load %arg6[%c0_2, %c0_3, %c0_4] : memref<1x1x8xf32, #tpu.memory_space<vmem>>, vector<1x1x8xf32>
    %3 = vector.shape_cast %2 : vector<1x1x8xf32> to vector<1x8xf32>
    %4 = vector.broadcast %1 : vector<8x1xf32> to vector<8x8xf32>
    %5 = vector.broadcast %3 : vector<1x8xf32> to vector<8x8xf32>
    %6 = arith.mulf %4, %5 : vector<8x8xf32>
    %cst = arith.constant 5.000000e-01 : f32
    %7 = vector.broadcast %cst : f32 to vector<8x8xf32>
    %8 = arith.cmpf ogt, %6, %7 : vector<8x8xf32>
    %9 = tpu.iota {dimensions = array<i32: 1>} : vector<8x8xi32>
    %c0_i32 = arith.constant 0 : i32
    %10 = vector.broadcast %c0_i32 : i32 to vector<8x8xi32>
    %11 = arith.cmpi eq, %9, %10 : vector<8x8xi32>
    %12 = arith.ori %8, %11 : vector<8x8xi1>
    %cst_5 = arith.constant 0.000000e+00 : f32
    %cst_6 = arith.constant -1.000000e+30 : f32
    %13 = vector.broadcast %cst_5 : f32 to vector<8x8xf32>
    %14 = vector.broadcast %cst_6 : f32 to vector<8x8xf32>
    %15 = arith.select %12, %13, %14 : vector<8x8xi1>, vector<8x8xf32>
    %c0_7 = arith.constant 0 : index
    %c0_8 = arith.constant 0 : index
    %c0_9 = arith.constant 0 : index
    %16 = vector.load %arg2[%c0_7, %c0_8, %c0_9] : memref<1x8x32xbf16, #tpu.memory_space<vmem>>, vector<1x8x32xbf16>
    %17 = vector.shape_cast %16 : vector<1x8x32xbf16> to vector<8x32xbf16>
    %c0_10 = arith.constant 0 : index
    %c0_11 = arith.constant 0 : index
    %c0_12 = arith.constant 0 : index
    %18 = vector.load %arg3[%c0_10, %c0_11, %c0_12] : memref<1x8x32xbf16, #tpu.memory_space<vmem>>, vector<1x8x32xbf16>
    %19 = vector.shape_cast %18 : vector<1x8x32xbf16> to vector<8x32xbf16>
    %c0_13 = arith.constant 0 : index
    %c0_14 = arith.constant 0 : index
    %c0_15 = arith.constant 0 : index
    %20 = vector.load %arg4[%c0_13, %c0_14, %c0_15] : memref<1x8x32xbf16, #tpu.memory_space<vmem>>, vector<1x8x32xbf16>
    %21 = vector.shape_cast %20 : vector<1x8x32xbf16> to vector<8x32xbf16>
    %22 = vector.extract_strided_slice %17 {offsets = [0, 0], sizes = [8, 16], strides = [1, 1]} : vector<8x32xbf16> to vector<8x16xbf16>
    %23 = vector.extract_strided_slice %19 {offsets = [0, 0], sizes = [8, 16], strides = [1, 1]} : vector<8x32xbf16> to vector<8x16xbf16>
    %cst_16 = arith.constant dense<0.000000e+00> : vector<8x8xf32>
    %24 = tpu.matmul %22, %23, %cst_16 {dimension_numbers = #tpu.dot_dimension_numbers<[1], [1], [0], [0], [0, 0, 1, 0], [], []>} : vector<8x16xbf16>, vector<8x16xbf16>, vector<8x8xf32> -> vector<8x8xf32>
    %cst_17 = arith.constant 2.500000e-01 : f32
    %25 = vector.broadcast %cst_17 : f32 to vector<8x8xf32>
    %26 = arith.mulf %24, %25 : vector<8x8xf32>
    %27 = arith.addf %26, %15 : vector<8x8xf32>
    %cst_18 = arith.constant dense<0xFF800000> : vector<8xf32>
    %28 = vector.multi_reduction <maximumf>, %27, %cst_18 [1] : vector<8x8xf32> to vector<8xf32>
    %29 = vector.shape_cast %28 : vector<8xf32> to vector<8x1xf32>
    %30 = vector.broadcast %29 : vector<8x1xf32> to vector<8x8xf32>
    %31 = arith.subf %27, %30 : vector<8x8xf32>
    %32 = math.exp %31 : vector<8x8xf32>
    %cst_19 = arith.constant dense<0.000000e+00> : vector<8xf32>
    %33 = vector.multi_reduction <add>, %32, %cst_19 [1] : vector<8x8xf32> to vector<8xf32>
    %34 = vector.shape_cast %33 : vector<8xf32> to vector<8x1xf32>
    %35 = arith.truncf %32 : vector<8x8xf32> to vector<8x8xbf16>
    %36 = vector.extract_strided_slice %21 {offsets = [0, 0], sizes = [8, 16], strides = [1, 1]} : vector<8x32xbf16> to vector<8x16xbf16>
    %cst_20 = arith.constant dense<0.000000e+00> : vector<8x16xf32>
    %37 = tpu.matmul %35, %36, %cst_20 {dimension_numbers = #tpu.dot_dimension_numbers<[1], [0], [0], [1], [0, 0, 1, 1], [], []>} : vector<8x8xbf16>, vector<8x16xbf16>, vector<8x16xf32> -> vector<8x16xf32>
    %38 = tpu.reciprocal %34 {approx = true} : vector<8x1xf32> -> vector<8x1xf32>
    %39 = vector.broadcast %38 : vector<8x1xf32> to vector<8x16xf32>
    %40 = arith.mulf %37, %39 : vector<8x16xf32>
    %41 = arith.truncf %40 : vector<8x16xf32> to vector<8x16xbf16>
    %c0_21 = arith.constant 0 : index
    %c0_22 = arith.constant 0 : index
    %c0_23 = arith.constant 0 : index
    %42 = vector.load %arg7[%c0_21, %c0_22, %c0_23] : memref<1x8x32xbf16, #tpu.memory_space<vmem>>, vector<1x8x16xbf16>
    %43 = vector.shape_cast %42 : vector<1x8x16xbf16> to vector<8x16xbf16>
    %44 = vector.shape_cast %41 : vector<8x16xbf16> to vector<1x8x16xbf16>
    tpu.vector_store %arg7[%c0_21, %c0_22, %c0_23], %44 {strides = array<i32>} : memref<1x8x32xbf16, #tpu.memory_space<vmem>>, vector<1x8x16xbf16>,
    %45 = vector.extract_strided_slice %17 {offsets = [0, 16], sizes = [8, 16], strides = [1, 1]} : vector<8x32xbf16> to vector<8x16xbf16>
    %46 = vector.extract_strided_slice %19 {offsets = [0, 16], sizes = [8, 16], strides = [1, 1]} : vector<8x32xbf16> to vector<8x16xbf16>
    %cst_24 = arith.constant dense<0.000000e+00> : vector<8x8xf32>
    %47 = tpu.matmul %45, %46, %cst_24 {dimension_numbers = #tpu.dot_dimension_numbers<[1], [1], [0], [0], [0, 0, 1, 0], [], []>} : vector<8x16xbf16>, vector<8x16xbf16>, vector<8x8xf32> -> vector<8x8xf32>
    %cst_25 = arith.constant 2.500000e-01 : f32
    %48 = vector.broadcast %cst_25 : f32 to vector<8x8xf32>
    %49 = arith.mulf %47, %48 : vector<8x8xf32>
    %50 = arith.addf %49, %15 : vector<8x8xf32>
    %cst_26 = arith.constant dense<0xFF800000> : vector<8xf32>
    %51 = vector.multi_reduction <maximumf>, %50, %cst_26 [1] : vector<8x8xf32> to vector<8xf32>
    %52 = vector.shape_cast %51 : vector<8xf32> to vector<8x1xf32>
    %53 = vector.broadcast %52 : vector<8x1xf32> to vector<8x8xf32>
    %54 = arith.subf %50, %53 : vector<8x8xf32>
    %55 = math.exp %54 : vector<8x8xf32>
    %cst_27 = arith.constant dense<0.000000e+00> : vector<8xf32>
    %56 = vector.multi_reduction <add>, %55, %cst_27 [1] : vector<8x8xf32> to vector<8xf32>
    %57 = vector.shape_cast %56 : vector<8xf32> to vector<8x1xf32>
    %58 = arith.truncf %55 : vector<8x8xf32> to vector<8x8xbf16>
    %59 = vector.extract_strided_slice %21 {offsets = [0, 16], sizes = [8, 16], strides = [1, 1]} : vector<8x32xbf16> to vector<8x16xbf16>
    %cst_28 = arith.constant dense<0.000000e+00> : vector<8x16xf32>
    %60 = tpu.matmul %58, %59, %cst_28 {dimension_numbers = #tpu.dot_dimension_numbers<[1], [0], [0], [1], [0, 0, 1, 1], [], []>} : vector<8x8xbf16>, vector<8x16xbf16>, vector<8x16xf32> -> vector<8x16xf32>
    %61 = tpu.reciprocal %57 {approx = true} : vector<8x1xf32> -> vector<8x1xf32>
    %62 = vector.broadcast %61 : vector<8x1xf32> to vector<8x16xf32>
    %63 = arith.mulf %60, %62 : vector<8x16xf32>
    %64 = arith.truncf %63 : vector<8x16xf32> to vector<8x16xbf16>
    %c0_29 = arith.constant 0 : index
    %c0_30 = arith.constant 0 : index
    %c16 = arith.constant 16 : index
    %65 = vector.load %arg7[%c0_29, %c0_30, %c16] : memref<1x8x32xbf16, #tpu.memory_space<vmem>>, vector<1x8x16xbf16>
    %66 = vector.shape_cast %65 : vector<1x8x16xbf16> to vector<8x16xbf16>
    %67 = vector.shape_cast %64 : vector<8x16xbf16> to vector<1x8x16xbf16>
    tpu.vector_store %arg7[%c0_29, %c0_30, %c16], %67 {strides = array<i32>} : memref<1x8x32xbf16, #tpu.memory_space<vmem>>, vector<1x8x16xbf16>,
    return
  }
  func.func @transform_0(%arg0: i32, %arg1: i32) -> (i32, i32, i32) {
    %c0_i32 = arith.constant 0 : i32
    %c0_i32_0 = arith.constant 0 : i32
    return %arg0, %c0_i32, %arg1 : i32, i32, i32
  }
  func.func @transform_1(%arg0: i32, %arg1: i32) -> (i32, i32, i32) {
    %c0_i32 = arith.constant 0 : i32
    %c0_i32_0 = arith.constant 0 : i32
    return %arg0, %c0_i32, %arg1 : i32, i32, i32
  }
  func.func @transform_2(%arg0: i32, %arg1: i32) -> (i32, i32, i32) {
    %c0_i32 = arith.constant 0 : i32
    %c0_i32_0 = arith.constant 0 : i32
    return %arg0, %c0_i32, %arg1 : i32, i32, i32
  }
  func.func @transform_3(%arg0: i32, %arg1: i32) -> (i32, i32, i32) {
    %c0_i32 = arith.constant 0 : i32
    %c0_i32_0 = arith.constant 0 : i32
    %c0_i32_1 = arith.constant 0 : i32
    return %arg0, %c0_i32, %c0_i32_0 : i32, i32, i32
  }
  func.func @transform_4(%arg0: i32, %arg1: i32) -> (i32, i32, i32) {
    %c0_i32 = arith.constant 0 : i32
    %c0_i32_0 = arith.constant 0 : i32
    %c0_i32_1 = arith.constant 0 : i32
    return %arg0, %c0_i32, %c0_i32_0 : i32, i32, i32
  }
  func.func @transform_5(%arg0: i32, %arg1: i32) -> (i32, i32, i32) {
    %c0_i32 = arith.constant 0 : i32
    %c0_i32_0 = arith.constant 0 : i32
    return %arg0, %c0_i32, %arg1 : i32, i32, i32
  }
}

module attributes {stable_mosaic.version = 11 : i64} {
  func.func @_proj_gate_res_kernel(%arg0: i32, %arg1: i32, %arg2: i32, %arg3: memref<1x8x32xbf16, #tpu.memory_space<vmem>>, %arg4: memref<32x32xbf16, #tpu.memory_space<vmem>>, %arg5: memref<1x32xbf16, #tpu.memory_space<vmem>>, %arg6: memref<1x1x32xf32, #tpu.memory_space<vmem>>, %arg7: memref<1x8x32xf32, #tpu.memory_space<vmem>>, %arg8: memref<1x8x32xf32, #tpu.memory_space<vmem>>, %arg9: memref<8x32xf32, #tpu.memory_space<vmem>>) attributes {dimension_semantics = [#tpu.dimension_semantics<parallel>, #tpu.dimension_semantics<parallel>, #tpu.dimension_semantics<arbitrary>], iteration_bounds = array<i64: 2, 1, 1>, scalar_prefetch = 0 : i64, scratch_operands = 1 : i64, tpu.core_type = #tpu.core_type<tc>, window_params = [{transform_indices = @transform_0, window_bounds = array<i64: 1, 8, 32>}, {transform_indices = @transform_1, window_bounds = array<i64: 32, 32>}, {transform_indices = @transform_2, window_bounds = array<i64: 1, 32>}, {transform_indices = @transform_3, window_bounds = array<i64: 1, 1, 32>}, {transform_indices = @transform_4, window_bounds = array<i64: 1, 8, 32>}, {transform_indices = @transform_5, window_bounds = array<i64: 1, 8, 32>}]} {
    %c0_i32 = arith.constant 0 : i32
    %0 = arith.cmpi eq, %arg2, %c0_i32 : i32
    %1 = arith.extui %0 : i1 to i32
    %c0_i32_0 = arith.constant 0 : i32
    %2 = arith.cmpi ne, %1, %c0_i32_0 : i32
    scf.if %2 {
      %cst_11 = arith.constant 0.000000e+00 : f32
      %13 = vector.broadcast %cst_11 : f32 to vector<8x32xf32>
      %c0_12 = arith.constant 0 : index
      %c0_13 = arith.constant 0 : index
      %14 = vector.load %arg9[%c0_12, %c0_13] : memref<8x32xf32, #tpu.memory_space<vmem>>, vector<8x32xf32>
      tpu.vector_store %arg9[%c0_12, %c0_13], %13 {strides = array<i32>} : memref<8x32xf32, #tpu.memory_space<vmem>>, vector<8x32xf32>,
    } else {
    }
    %c0 = arith.constant 0 : index
    %c0_1 = arith.constant 0 : index
    %3 = vector.load %arg9[%c0, %c0_1] : memref<8x32xf32, #tpu.memory_space<vmem>>, vector<8x32xf32>
    %c0_2 = arith.constant 0 : index
    %c0_3 = arith.constant 0 : index
    %c0_4 = arith.constant 0 : index
    %4 = vector.load %arg3[%c0_2, %c0_3, %c0_4] : memref<1x8x32xbf16, #tpu.memory_space<vmem>>, vector<1x8x32xbf16>
    %5 = vector.shape_cast %4 : vector<1x8x32xbf16> to vector<8x32xbf16>
    %c0_5 = arith.constant 0 : index
    %c0_6 = arith.constant 0 : index
    %6 = vector.load %arg4[%c0_5, %c0_6] : memref<32x32xbf16, #tpu.memory_space<vmem>>, vector<32x32xbf16>
    %cst = arith.constant dense<0.000000e+00> : vector<8x32xf32>
    %7 = tpu.matmul %5, %6, %cst {dimension_numbers = #tpu.dot_dimension_numbers<[1], [0], [0], [1], [0, 0, 1, 1], [], []>} : vector<8x32xbf16>, vector<32x32xbf16>, vector<8x32xf32> -> vector<8x32xf32>
    %8 = arith.addf %3, %7 : vector<8x32xf32>
    %c0_7 = arith.constant 0 : index
    %c0_8 = arith.constant 0 : index
    %9 = vector.load %arg9[%c0_7, %c0_8] : memref<8x32xf32, #tpu.memory_space<vmem>>, vector<8x32xf32>
    tpu.vector_store %arg9[%c0_7, %c0_8], %8 {strides = array<i32>} : memref<8x32xf32, #tpu.memory_space<vmem>>, vector<8x32xf32>,
    %c0_i32_9 = arith.constant 0 : i32
    %10 = arith.cmpi eq, %arg2, %c0_i32_9 : i32
    %11 = arith.extui %10 : i1 to i32
    %c0_i32_10 = arith.constant 0 : i32
    %12 = arith.cmpi ne, %11, %c0_i32_10 : i32
    scf.if %12 {
      %c0_11 = arith.constant 0 : index
      %c0_12 = arith.constant 0 : index
      %13 = vector.load %arg9[%c0_11, %c0_12] : memref<8x32xf32, #tpu.memory_space<vmem>>, vector<8x32xf32>
      %c0_13 = arith.constant 0 : index
      %c0_14 = arith.constant 0 : index
      %14 = vector.load %arg5[%c0_13, %c0_14] : memref<1x32xbf16, #tpu.memory_space<vmem>>, vector<1x32xbf16>
      %15 = arith.extf %14 : vector<1x32xbf16> to vector<1x32xf32>
      %16 = vector.broadcast %15 : vector<1x32xf32> to vector<8x32xf32>
      %17 = arith.addf %13, %16 : vector<8x32xf32>
      %c0_15 = arith.constant 0 : index
      %c0_16 = arith.constant 0 : index
      %c0_17 = arith.constant 0 : index
      %18 = vector.load %arg7[%c0_15, %c0_16, %c0_17] : memref<1x8x32xf32, #tpu.memory_space<vmem>>, vector<1x8x32xf32>
      %19 = vector.shape_cast %18 : vector<1x8x32xf32> to vector<8x32xf32>
      %c0_18 = arith.constant 0 : index
      %c0_19 = arith.constant 0 : index
      %c0_20 = arith.constant 0 : index
      %20 = vector.load %arg6[%c0_18, %c0_19, %c0_20] : memref<1x1x32xf32, #tpu.memory_space<vmem>>, vector<1x1x32xf32>
      %21 = vector.shape_cast %20 : vector<1x1x32xf32> to vector<1x32xf32>
      %22 = vector.broadcast %21 : vector<1x32xf32> to vector<8x32xf32>
      %23 = arith.mulf %17, %22 : vector<8x32xf32>
      %24 = arith.addf %19, %23 : vector<8x32xf32>
      %c0_21 = arith.constant 0 : index
      %c0_22 = arith.constant 0 : index
      %c0_23 = arith.constant 0 : index
      %25 = vector.load %arg8[%c0_21, %c0_22, %c0_23] : memref<1x8x32xf32, #tpu.memory_space<vmem>>, vector<1x8x32xf32>
      %26 = vector.shape_cast %25 : vector<1x8x32xf32> to vector<8x32xf32>
      %27 = vector.shape_cast %24 : vector<8x32xf32> to vector<1x8x32xf32>
      tpu.vector_store %arg8[%c0_21, %c0_22, %c0_23], %27 {strides = array<i32>} : memref<1x8x32xf32, #tpu.memory_space<vmem>>, vector<1x8x32xf32>,
    } else {
    }
    return
  }
  func.func @transform_0(%arg0: i32, %arg1: i32, %arg2: i32) -> (i32, i32, i32) {
    %c0_i32 = arith.constant 0 : i32
    %c0_i32_0 = arith.constant 0 : i32
    return %arg0, %c0_i32, %arg2 : i32, i32, i32
  }
  func.func @transform_1(%arg0: i32, %arg1: i32, %arg2: i32) -> (i32, i32) {
    %c0_i32 = arith.constant 0 : i32
    return %arg2, %arg1 : i32, i32
  }
  func.func @transform_2(%arg0: i32, %arg1: i32, %arg2: i32) -> (i32, i32) {
    %c0_i32 = arith.constant 0 : i32
    %c0_i32_0 = arith.constant 0 : i32
    return %c0_i32, %arg1 : i32, i32
  }
  func.func @transform_3(%arg0: i32, %arg1: i32, %arg2: i32) -> (i32, i32, i32) {
    %c0_i32 = arith.constant 0 : i32
    %c0_i32_0 = arith.constant 0 : i32
    return %arg0, %c0_i32, %arg1 : i32, i32, i32
  }
  func.func @transform_4(%arg0: i32, %arg1: i32, %arg2: i32) -> (i32, i32, i32) {
    %c0_i32 = arith.constant 0 : i32
    %c0_i32_0 = arith.constant 0 : i32
    return %arg0, %c0_i32, %arg1 : i32, i32, i32
  }
  func.func @transform_5(%arg0: i32, %arg1: i32, %arg2: i32) -> (i32, i32, i32) {
    %c0_i32 = arith.constant 0 : i32
    %c0_i32_0 = arith.constant 0 : i32
    return %arg0, %c0_i32, %arg1 : i32, i32, i32
  }
}

module attributes {stable_mosaic.version = 11 : i64} {
  func.func @kernel(%arg0: i32, %arg1: memref<16x32xf32, #tpu.memory_space<vmem>>, %arg2: memref<1x32xf32, #tpu.memory_space<vmem>>, %arg3: memref<1x32xf32, #tpu.memory_space<vmem>>, %arg4: memref<32x128xbf16, #tpu.memory_space<vmem>>, %arg5: memref<1x128xbf16, #tpu.memory_space<vmem>>, %arg6: memref<16x128xbf16, #tpu.memory_space<vmem>>) attributes {dimension_semantics = [#tpu.dimension_semantics<parallel>], iteration_bounds = array<i64: 1>, scalar_prefetch = 0 : i64, scratch_operands = 0 : i64, tpu.core_type = #tpu.core_type<tc>, window_params = [{pipeline_mode = #tpu.pipeline_mode<synchronous>, transform_indices = @transform_0, window_bounds = array<i64: 16, 32>}, {pipeline_mode = #tpu.pipeline_mode<synchronous>, transform_indices = @transform_1, window_bounds = array<i64: 1, 32>}, {pipeline_mode = #tpu.pipeline_mode<synchronous>, transform_indices = @transform_2, window_bounds = array<i64: 1, 32>}, {transform_indices = @transform_3, window_bounds = array<i64: 32, 128>}, {transform_indices = @transform_4, window_bounds = array<i64: 1, 128>}, {transform_indices = @transform_5, window_bounds = array<i64: 16, 128>}]} {
    %c0 = arith.constant 0 : index
    %c0_0 = arith.constant 0 : index
    %0 = vector.load %arg1[%c0, %c0_0] : memref<16x32xf32, #tpu.memory_space<vmem>>, vector<16x32xf32>
    %cst = arith.constant dense<0.000000e+00> : vector<16xf32>
    %1 = vector.multi_reduction <add>, %0, %cst [1] : vector<16x32xf32> to vector<16xf32>
    %2 = vector.shape_cast %1 : vector<16xf32> to vector<16x1xf32>
    %cst_1 = arith.constant 3.200000e+01 : f32
    %3 = vector.broadcast %cst_1 : f32 to vector<16x1xf32>
    %4 = arith.divf %2, %3 : vector<16x1xf32>
    %5 = vector.broadcast %4 : vector<16x1xf32> to vector<16x32xf32>
    %6 = arith.subf %0, %5 : vector<16x32xf32>
    %7 = arith.mulf %6, %6 : vector<16x32xf32>
    %cst_2 = arith.constant dense<0.000000e+00> : vector<16xf32>
    %8 = vector.multi_reduction <add>, %7, %cst_2 [1] : vector<16x32xf32> to vector<16xf32>
    %9 = vector.shape_cast %8 : vector<16xf32> to vector<16x1xf32>
    %cst_3 = arith.constant 3.200000e+01 : f32
    %10 = vector.broadcast %cst_3 : f32 to vector<16x1xf32>
    %11 = arith.divf %9, %10 : vector<16x1xf32>
    %cst_4 = arith.constant 9.99999997E-7 : f32
    %12 = vector.broadcast %cst_4 : f32 to vector<16x1xf32>
    %13 = arith.addf %11, %12 : vector<16x1xf32>
    %14 = math.rsqrt %13 : vector<16x1xf32>
    %15 = vector.broadcast %14 : vector<16x1xf32> to vector<16x32xf32>
    %16 = arith.mulf %6, %15 : vector<16x32xf32>
    %c0_5 = arith.constant 0 : index
    %c0_6 = arith.constant 0 : index
    %17 = vector.load %arg2[%c0_5, %c0_6] : memref<1x32xf32, #tpu.memory_space<vmem>>, vector<1x32xf32>
    %18 = vector.broadcast %17 : vector<1x32xf32> to vector<16x32xf32>
    %19 = arith.mulf %16, %18 : vector<16x32xf32>
    %c0_7 = arith.constant 0 : index
    %c0_8 = arith.constant 0 : index
    %20 = vector.load %arg3[%c0_7, %c0_8] : memref<1x32xf32, #tpu.memory_space<vmem>>, vector<1x32xf32>
    %21 = vector.broadcast %20 : vector<1x32xf32> to vector<16x32xf32>
    %22 = arith.addf %19, %21 : vector<16x32xf32>
    %23 = arith.truncf %22 : vector<16x32xf32> to vector<16x32xbf16>
    %c0_9 = arith.constant 0 : index
    %c0_10 = arith.constant 0 : index
    %24 = vector.load %arg4[%c0_9, %c0_10] : memref<32x128xbf16, #tpu.memory_space<vmem>>, vector<32x128xbf16>
    %cst_11 = arith.constant dense<0.000000e+00> : vector<16x128xf32>
    %25 = tpu.matmul %23, %24, %cst_11 {dimension_numbers = #tpu.dot_dimension_numbers<[1], [0], [0], [1], [0, 0, 1, 1], [], []>} : vector<16x32xbf16>, vector<32x128xbf16>, vector<16x128xf32> -> vector<16x128xf32>
    %c0_12 = arith.constant 0 : index
    %c0_13 = arith.constant 0 : index
    %26 = vector.load %arg5[%c0_12, %c0_13] : memref<1x128xbf16, #tpu.memory_space<vmem>>, vector<1x128xbf16>
    %27 = arith.extf %26 : vector<1x128xbf16> to vector<1x128xf32>
    %28 = vector.broadcast %27 : vector<1x128xf32> to vector<16x128xf32>
    %29 = arith.addf %25, %28 : vector<16x128xf32>
    %30 = arith.negf %29 : vector<16x128xf32>
    %31 = math.exp %30 : vector<16x128xf32>
    %cst_14 = arith.constant 1.000000e+00 : f32
    %32 = vector.broadcast %cst_14 : f32 to vector<16x128xf32>
    %33 = arith.addf %32, %31 : vector<16x128xf32>
    %34 = arith.divf %32, %33 : vector<16x128xf32>
    %35 = arith.mulf %29, %34 : vector<16x128xf32>
    %36 = arith.truncf %35 : vector<16x128xf32> to vector<16x128xbf16>
    %c0_15 = arith.constant 0 : index
    %c0_16 = arith.constant 0 : index
    %37 = vector.load %arg6[%c0_15, %c0_16] : memref<16x128xbf16, #tpu.memory_space<vmem>>, vector<16x128xbf16>
    tpu.vector_store %arg6[%c0_15, %c0_16], %36 {strides = array<i32>} : memref<16x128xbf16, #tpu.memory_space<vmem>>, vector<16x128xbf16>,
    return
  }
  func.func @transform_0(%arg0: i32) -> (i32, i32) {
    %c0_i32 = arith.constant 0 : i32
    %c0_i32_0 = arith.constant 0 : i32
    %c0_i32_1 = arith.constant 0 : i32
    return %c0_i32, %c0_i32_0 : i32, i32
  }
  func.func @transform_1(%arg0: i32) -> (i32, i32) {
    %c0_i32 = arith.constant 0 : i32
    %c0_i32_0 = arith.constant 0 : i32
    %c0_i32_1 = arith.constant 0 : i32
    return %c0_i32, %c0_i32_0 : i32, i32
  }
  func.func @transform_2(%arg0: i32) -> (i32, i32) {
    %c0_i32 = arith.constant 0 : i32
    %c0_i32_0 = arith.constant 0 : i32
    %c0_i32_1 = arith.constant 0 : i32
    return %c0_i32, %c0_i32_0 : i32, i32
  }
  func.func @transform_3(%arg0: i32) -> (i32, i32) {
    %c0_i32 = arith.constant 0 : i32
    %c0_i32_0 = arith.constant 0 : i32
    return %c0_i32, %arg0 : i32, i32
  }
  func.func @transform_4(%arg0: i32) -> (i32, i32) {
    %c0_i32 = arith.constant 0 : i32
    %c0_i32_0 = arith.constant 0 : i32
    return %c0_i32, %arg0 : i32, i32
  }
  func.func @transform_5(%arg0: i32) -> (i32, i32) {
    %c0_i32 = arith.constant 0 : i32
    %c0_i32_0 = arith.constant 0 : i32
    return %c0_i32, %arg0 : i32, i32
  }
}

module attributes {stable_mosaic.version = 11 : i64} {
  func.func @_proj_gate_res_kernel(%arg0: i32, %arg1: i32, %arg2: i32, %arg3: memref<1x8x128xbf16, #tpu.memory_space<vmem>>, %arg4: memref<128x32xbf16, #tpu.memory_space<vmem>>, %arg5: memref<1x32xbf16, #tpu.memory_space<vmem>>, %arg6: memref<1x1x32xf32, #tpu.memory_space<vmem>>, %arg7: memref<1x8x32xf32, #tpu.memory_space<vmem>>, %arg8: memref<1x8x32xf32, #tpu.memory_space<vmem>>, %arg9: memref<8x32xf32, #tpu.memory_space<vmem>>) attributes {dimension_semantics = [#tpu.dimension_semantics<parallel>, #tpu.dimension_semantics<parallel>, #tpu.dimension_semantics<arbitrary>], iteration_bounds = array<i64: 2, 1, 1>, scalar_prefetch = 0 : i64, scratch_operands = 1 : i64, tpu.core_type = #tpu.core_type<tc>, window_params = [{transform_indices = @transform_0, window_bounds = array<i64: 1, 8, 128>}, {transform_indices = @transform_1, window_bounds = array<i64: 128, 32>}, {transform_indices = @transform_2, window_bounds = array<i64: 1, 32>}, {transform_indices = @transform_3, window_bounds = array<i64: 1, 1, 32>}, {transform_indices = @transform_4, window_bounds = array<i64: 1, 8, 32>}, {transform_indices = @transform_5, window_bounds = array<i64: 1, 8, 32>}]} {
    %c0_i32 = arith.constant 0 : i32
    %0 = arith.cmpi eq, %arg2, %c0_i32 : i32
    %1 = arith.extui %0 : i1 to i32
    %c0_i32_0 = arith.constant 0 : i32
    %2 = arith.cmpi ne, %1, %c0_i32_0 : i32
    scf.if %2 {
      %cst_11 = arith.constant 0.000000e+00 : f32
      %13 = vector.broadcast %cst_11 : f32 to vector<8x32xf32>
      %c0_12 = arith.constant 0 : index
      %c0_13 = arith.constant 0 : index
      %14 = vector.load %arg9[%c0_12, %c0_13] : memref<8x32xf32, #tpu.memory_space<vmem>>, vector<8x32xf32>
      tpu.vector_store %arg9[%c0_12, %c0_13], %13 {strides = array<i32>} : memref<8x32xf32, #tpu.memory_space<vmem>>, vector<8x32xf32>,
    } else {
    }
    %c0 = arith.constant 0 : index
    %c0_1 = arith.constant 0 : index
    %3 = vector.load %arg9[%c0, %c0_1] : memref<8x32xf32, #tpu.memory_space<vmem>>, vector<8x32xf32>
    %c0_2 = arith.constant 0 : index
    %c0_3 = arith.constant 0 : index
    %c0_4 = arith.constant 0 : index
    %4 = vector.load %arg3[%c0_2, %c0_3, %c0_4] : memref<1x8x128xbf16, #tpu.memory_space<vmem>>, vector<1x8x128xbf16>
    %5 = vector.shape_cast %4 : vector<1x8x128xbf16> to vector<8x128xbf16>
    %c0_5 = arith.constant 0 : index
    %c0_6 = arith.constant 0 : index
    %6 = vector.load %arg4[%c0_5, %c0_6] : memref<128x32xbf16, #tpu.memory_space<vmem>>, vector<128x32xbf16>
    %cst = arith.constant dense<0.000000e+00> : vector<8x32xf32>
    %7 = tpu.matmul %5, %6, %cst {dimension_numbers = #tpu.dot_dimension_numbers<[1], [0], [0], [1], [0, 0, 1, 1], [], []>} : vector<8x128xbf16>, vector<128x32xbf16>, vector<8x32xf32> -> vector<8x32xf32>
    %8 = arith.addf %3, %7 : vector<8x32xf32>
    %c0_7 = arith.constant 0 : index
    %c0_8 = arith.constant 0 : index
    %9 = vector.load %arg9[%c0_7, %c0_8] : memref<8x32xf32, #tpu.memory_space<vmem>>, vector<8x32xf32>
    tpu.vector_store %arg9[%c0_7, %c0_8], %8 {strides = array<i32>} : memref<8x32xf32, #tpu.memory_space<vmem>>, vector<8x32xf32>,
    %c0_i32_9 = arith.constant 0 : i32
    %10 = arith.cmpi eq, %arg2, %c0_i32_9 : i32
    %11 = arith.extui %10 : i1 to i32
    %c0_i32_10 = arith.constant 0 : i32
    %12 = arith.cmpi ne, %11, %c0_i32_10 : i32
    scf.if %12 {
      %c0_11 = arith.constant 0 : index
      %c0_12 = arith.constant 0 : index
      %13 = vector.load %arg9[%c0_11, %c0_12] : memref<8x32xf32, #tpu.memory_space<vmem>>, vector<8x32xf32>
      %c0_13 = arith.constant 0 : index
      %c0_14 = arith.constant 0 : index
      %14 = vector.load %arg5[%c0_13, %c0_14] : memref<1x32xbf16, #tpu.memory_space<vmem>>, vector<1x32xbf16>
      %15 = arith.extf %14 : vector<1x32xbf16> to vector<1x32xf32>
      %16 = vector.broadcast %15 : vector<1x32xf32> to vector<8x32xf32>
      %17 = arith.addf %13, %16 : vector<8x32xf32>
      %c0_15 = arith.constant 0 : index
      %c0_16 = arith.constant 0 : index
      %c0_17 = arith.constant 0 : index
      %18 = vector.load %arg7[%c0_15, %c0_16, %c0_17] : memref<1x8x32xf32, #tpu.memory_space<vmem>>, vector<1x8x32xf32>
      %19 = vector.shape_cast %18 : vector<1x8x32xf32> to vector<8x32xf32>
      %c0_18 = arith.constant 0 : index
      %c0_19 = arith.constant 0 : index
      %c0_20 = arith.constant 0 : index
      %20 = vector.load %arg6[%c0_18, %c0_19, %c0_20] : memref<1x1x32xf32, #tpu.memory_space<vmem>>, vector<1x1x32xf32>
      %21 = vector.shape_cast %20 : vector<1x1x32xf32> to vector<1x32xf32>
      %22 = vector.broadcast %21 : vector<1x32xf32> to vector<8x32xf32>
      %23 = arith.mulf %17, %22 : vector<8x32xf32>
      %24 = arith.addf %19, %23 : vector<8x32xf32>
      %c0_21 = arith.constant 0 : index
      %c0_22 = arith.constant 0 : index
      %c0_23 = arith.constant 0 : index
      %25 = vector.load %arg8[%c0_21, %c0_22, %c0_23] : memref<1x8x32xf32, #tpu.memory_space<vmem>>, vector<1x8x32xf32>
      %26 = vector.shape_cast %25 : vector<1x8x32xf32> to vector<8x32xf32>
      %27 = vector.shape_cast %24 : vector<8x32xf32> to vector<1x8x32xf32>
      tpu.vector_store %arg8[%c0_21, %c0_22, %c0_23], %27 {strides = array<i32>} : memref<1x8x32xf32, #tpu.memory_space<vmem>>, vector<1x8x32xf32>,
    } else {
    }
    return
  }
  func.func @transform_0(%arg0: i32, %arg1: i32, %arg2: i32) -> (i32, i32, i32) {
    %c0_i32 = arith.constant 0 : i32
    %c0_i32_0 = arith.constant 0 : i32
    return %arg0, %c0_i32, %arg2 : i32, i32, i32
  }
  func.func @transform_1(%arg0: i32, %arg1: i32, %arg2: i32) -> (i32, i32) {
    %c0_i32 = arith.constant 0 : i32
    return %arg2, %arg1 : i32, i32
  }
  func.func @transform_2(%arg0: i32, %arg1: i32, %arg2: i32) -> (i32, i32) {
    %c0_i32 = arith.constant 0 : i32
    %c0_i32_0 = arith.constant 0 : i32
    return %c0_i32, %arg1 : i32, i32
  }
  func.func @transform_3(%arg0: i32, %arg1: i32, %arg2: i32) -> (i32, i32, i32) {
    %c0_i32 = arith.constant 0 : i32
    %c0_i32_0 = arith.constant 0 : i32
    return %arg0, %c0_i32, %arg1 : i32, i32, i32
  }
  func.func @transform_4(%arg0: i32, %arg1: i32, %arg2: i32) -> (i32, i32, i32) {
    %c0_i32 = arith.constant 0 : i32
    %c0_i32_0 = arith.constant 0 : i32
    return %arg0, %c0_i32, %arg1 : i32, i32, i32
  }
  func.func @transform_5(%arg0: i32, %arg1: i32, %arg2: i32) -> (i32, i32, i32) {
    %c0_i32 = arith.constant 0 : i32
    %c0_i32_0 = arith.constant 0 : i32
    return %arg0, %c0_i32, %arg1 : i32, i32, i32
  }
}

module attributes {stable_mosaic.version = 11 : i64} {
  func.func @_proj_gate_res_kernel(%arg0: i32, %arg1: i32, %arg2: i32, %arg3: memref<1x8x128xbf16, #tpu.memory_space<vmem>>, %arg4: memref<128x32xbf16, #tpu.memory_space<vmem>>, %arg5: memref<1x32xbf16, #tpu.memory_space<vmem>>, %arg6: memref<1x1x32xf32, #tpu.memory_space<vmem>>, %arg7: memref<1x8x32xf32, #tpu.memory_space<vmem>>, %arg8: memref<1x8x32xf32, #tpu.memory_space<vmem>>, %arg9: memref<8x32xf32, #tpu.memory_space<vmem>>) attributes {dimension_semantics = [#tpu.dimension_semantics<parallel>, #tpu.dimension_semantics<parallel>, #tpu.dimension_semantics<arbitrary>], iteration_bounds = array<i64: 2, 1, 1>, scalar_prefetch = 0 : i64, scratch_operands = 1 : i64, tpu.core_type = #tpu.core_type<tc>, window_params = [{transform_indices = @transform_0, window_bounds = array<i64: 1, 8, 128>}, {transform_indices = @transform_1, window_bounds = array<i64: 128, 32>}, {transform_indices = @transform_2, window_bounds = array<i64: 1, 32>}, {transform_indices = @transform_3, window_bounds = array<i64: 1, 1, 32>}, {transform_indices = @transform_4, window_bounds = array<i64: 1, 8, 32>}, {transform_indices = @transform_5, window_bounds = array<i64: 1, 8, 32>}]} {
    %c0_i32 = arith.constant 0 : i32
    %0 = arith.cmpi eq, %arg2, %c0_i32 : i32
    %1 = arith.extui %0 : i1 to i32
    %c0_i32_0 = arith.constant 0 : i32
    %2 = arith.cmpi ne, %1, %c0_i32_0 : i32
    scf.if %2 {
      %cst_11 = arith.constant 0.000000e+00 : f32
      %13 = vector.broadcast %cst_11 : f32 to vector<8x32xf32>
      %c0_12 = arith.constant 0 : index
      %c0_13 = arith.constant 0 : index
      %14 = vector.load %arg9[%c0_12, %c0_13] : memref<8x32xf32, #tpu.memory_space<vmem>>, vector<8x32xf32>
      tpu.vector_store %arg9[%c0_12, %c0_13], %13 {strides = array<i32>} : memref<8x32xf32, #tpu.memory_space<vmem>>, vector<8x32xf32>,
    } else {
    }
    %c0 = arith.constant 0 : index
    %c0_1 = arith.constant 0 : index
    %3 = vector.load %arg9[%c0, %c0_1] : memref<8x32xf32, #tpu.memory_space<vmem>>, vector<8x32xf32>
    %c0_2 = arith.constant 0 : index
    %c0_3 = arith.constant 0 : index
    %c0_4 = arith.constant 0 : index
    %4 = vector.load %arg3[%c0_2, %c0_3, %c0_4] : memref<1x8x128xbf16, #tpu.memory_space<vmem>>, vector<1x8x128xbf16>
    %5 = vector.shape_cast %4 : vector<1x8x128xbf16> to vector<8x128xbf16>
    %c0_5 = arith.constant 0 : index
    %c0_6 = arith.constant 0 : index
    %6 = vector.load %arg4[%c0_5, %c0_6] : memref<128x32xbf16, #tpu.memory_space<vmem>>, vector<128x32xbf16>
    %cst = arith.constant dense<0.000000e+00> : vector<8x32xf32>
    %7 = tpu.matmul %5, %6, %cst {dimension_numbers = #tpu.dot_dimension_numbers<[1], [0], [0], [1], [0, 0, 1, 1], [], []>} : vector<8x128xbf16>, vector<128x32xbf16>, vector<8x32xf32> -> vector<8x32xf32>
    %8 = arith.addf %3, %7 : vector<8x32xf32>
    %c0_7 = arith.constant 0 : index
    %c0_8 = arith.constant 0 : index
    %9 = vector.load %arg9[%c0_7, %c0_8] : memref<8x32xf32, #tpu.memory_space<vmem>>, vector<8x32xf32>
    tpu.vector_store %arg9[%c0_7, %c0_8], %8 {strides = array<i32>} : memref<8x32xf32, #tpu.memory_space<vmem>>, vector<8x32xf32>,
    %c0_i32_9 = arith.constant 0 : i32
    %10 = arith.cmpi eq, %arg2, %c0_i32_9 : i32
    %11 = arith.extui %10 : i1 to i32
    %c0_i32_10 = arith.constant 0 : i32
    %12 = arith.cmpi ne, %11, %c0_i32_10 : i32
    scf.if %12 {
      %c0_11 = arith.constant 0 : index
      %c0_12 = arith.constant 0 : index
      %13 = vector.load %arg9[%c0_11, %c0_12] : memref<8x32xf32, #tpu.memory_space<vmem>>, vector<8x32xf32>
      %c0_13 = arith.constant 0 : index
      %c0_14 = arith.constant 0 : index
      %14 = vector.load %arg5[%c0_13, %c0_14] : memref<1x32xbf16, #tpu.memory_space<vmem>>, vector<1x32xbf16>
      %15 = arith.extf %14 : vector<1x32xbf16> to vector<1x32xf32>
      %16 = vector.broadcast %15 : vector<1x32xf32> to vector<8x32xf32>
      %17 = arith.addf %13, %16 : vector<8x32xf32>
      %c0_15 = arith.constant 0 : index
      %c0_16 = arith.constant 0 : index
      %c0_17 = arith.constant 0 : index
      %18 = vector.load %arg7[%c0_15, %c0_16, %c0_17] : memref<1x8x32xf32, #tpu.memory_space<vmem>>, vector<1x8x32xf32>
      %19 = vector.shape_cast %18 : vector<1x8x32xf32> to vector<8x32xf32>
      %c0_18 = arith.constant 0 : index
      %c0_19 = arith.constant 0 : index
      %c0_20 = arith.constant 0 : index
      %20 = vector.load %arg6[%c0_18, %c0_19, %c0_20] : memref<1x1x32xf32, #tpu.memory_space<vmem>>, vector<1x1x32xf32>
      %21 = vector.shape_cast %20 : vector<1x1x32xf32> to vector<1x32xf32>
      %22 = vector.broadcast %21 : vector<1x32xf32> to vector<8x32xf32>
      %23 = arith.mulf %17, %22 : vector<8x32xf32>
      %24 = arith.addf %19, %23 : vector<8x32xf32>
      %c0_21 = arith.constant 0 : index
      %c0_22 = arith.constant 0 : index
      %c0_23 = arith.constant 0 : index
      %25 = vector.load %arg8[%c0_21, %c0_22, %c0_23] : memref<1x8x32xf32, #tpu.memory_space<vmem>>, vector<1x8x32xf32>
      %26 = vector.shape_cast %25 : vector<1x8x32xf32> to vector<8x32xf32>
      %27 = vector.shape_cast %24 : vector<8x32xf32> to vector<1x8x32xf32>
      tpu.vector_store %arg8[%c0_21, %c0_22, %c0_23], %27 {strides = array<i32>} : memref<1x8x32xf32, #tpu.memory_space<vmem>>, vector<1x8x32xf32>,
    } else {
    }
    return
  }
  func.func @transform_0(%arg0: i32, %arg1: i32, %arg2: i32) -> (i32, i32, i32) {
    %c0_i32 = arith.constant 0 : i32
    %c0_i32_0 = arith.constant 0 : i32
    return %arg0, %c0_i32, %arg2 : i32, i32, i32
  }
  func.func @transform_1(%arg0: i32, %arg1: i32, %arg2: i32) -> (i32, i32) {
    %c0_i32 = arith.constant 0 : i32
    return %arg2, %arg1 : i32, i32
  }
  func.func @transform_2(%arg0: i32, %arg1: i32, %arg2: i32) -> (i32, i32) {
    %c0_i32 = arith.constant 0 : i32
    %c0_i32_0 = arith.constant 0 : i32
    return %c0_i32, %arg1 : i32, i32
  }
  func.func @transform_3(%arg0: i32, %arg1: i32, %arg2: i32) -> (i32, i32, i32) {
    %c0_i32 = arith.constant 0 : i32
    %c0_i32_0 = arith.constant 0 : i32
    return %arg0, %c0_i32, %arg1 : i32, i32, i32
  }
  func.func @transform_4(%arg0: i32, %arg1: i32, %arg2: i32) -> (i32, i32, i32) {
    %c0_i32 = arith.constant 0 : i32
    %c0_i32_0 = arith.constant 0 : i32
    return %arg0, %c0_i32, %arg1 : i32, i32, i32
  }
  func.func @transform_5(%arg0: i32, %arg1: i32, %arg2: i32) -> (i32, i32, i32) {
    %c0_i32 = arith.constant 0 : i32
    %c0_i32_0 = arith.constant 0 : i32
    return %arg0, %c0_i32, %arg1 : i32, i32, i32
  }
}

</mosaic_0001>

<bundles_post_ra>
// kernel: hunyuan_video_individual_token_refiner.11
= control target key start
LH: loop header
LB: loop body
LE: loop exit
PB: predicated region body
PF: predicated region fallthrough
CT: control target
= control target key end

     0   :  { %s821_s21 = smov 0   ;;  %s823_s22 = smov 0   ;;  %s875_s0 = inlined_call_operand.vmem [shape: f32[2,32], index: 0, kind: input, shape index: {}]   ;;  %s876_s1 = inlined_call_operand.vmem [shape: bf16[2,32,32], index: 1, kind: input, shape index: {}]   ;;  %s877_s2 = inlined_call_operand.vmem [shape: bf16[2,32,32], index: 2, kind: input, shape index: {}]   ;;  %s878_s3 = inlined_call_operand.vmem [shape: bf16[2,1,32], index: 3, kind: input, shape index: {}]   ;;  %s879_s4 = inlined_call_operand.vmem [shape: bf16[2,1,32], index: 4, kind: input, shape index: {}]   ;;  %s880_s5 = inlined_call_operand.vmem [shape: f32[2,2,32], index: 5, kind: output, shape index: {0}]   ;;  %s881_s6 = inlined_call_operand.vmem [shape: f32[2,2,32], index: 6, kind: output, shape index: {1}]  }
   0x1   :  { %s825_s23 = smov 0  }
   0x2 LB: > { %s29_s24 = sadd.s32 1, %s778_s22  ;;  %p686_p0 = scmp.ge.s32.totalorder %s782_s23, 1  ;;  %s782_s23 = sphi %s825_s23, %s17_s23   ;;  %s778_s22 = sphi %s823_s22, %s883_s22   ;;  %s774_s21 = sphi %s821_s21, %s882_s21  }
   0x3   : > { %p31_p1 = scmp.ge.s32.totalorder %s29_s24, 2  ;;  %p277_p2 = scmp.lt.s32.totalorder %s782_s23, 3 }
   0x5   : > { %s885_s24 = smov (%p31_p1, %s29_s24), 0  ;;  %p278_p3 = pnand %p686_p0, %p277_p2 }
   0x6   : > { %p339_p4 = scmp.lt.s32.totalorder (!%p278_p3), %s774_s21, 1  ;;  %v382_v0 = vld [vmem:[%s875_s0] sm:$0x3] (!%p278_p3)  ;;  %v784_v1 = vmov (!%p278_p3), 0.0   ;;  %vm785_vm0 = vmmov (!%p278_p3), 0   ;;  %vm417_vm1 = vcmask (!%p278_p3), 261120   ;;  %v401_v12 = vlaneseq (!%p278_p3) }
   0x7   : > { %281 = sbr.rel (%p278_p3) target bundleno = 252 (0xfc), region = 40  ;;  %710 = vmatprep.subr.bf16.mxu0 (!%p278_p3), %v784_v1  ;;  %718 = vmatprep.subr.bf16.mxu1 (!%p278_p3), %v784_v1  ;;  %v693_v2 = vmul.f32 (!%p278_p3), -1.442695, %v382_v0  ;;  %vm461_vm2 = vcmask (!%p278_p3), 254976  }
   0x8   : > { %714 = vmatprep.mubr.msk.bf16.mxu0 (!%p278_p3), %vm785_vm0, %v784_v1  ;;  %722 = vmatprep.mubr.msk.bf16.mxu1 (!%p278_p3), %vm785_vm0, %v784_v1  ;;  %v402_v13 = vshrl.u32 (!%p278_p3), %v401_v12, 7 }
   0x9   : > { %756 = vpow2.f32 (!%p278_p3), %v693_v2 }
   0xa   : > { %v403_v17 = vsub.s32 (!%p278_p3), 0, %v402_v13 }
   0xe   : > { %s887_s21 = smov (!%p339_p4, %s774_s21), 1 }
   0xf   : > { %s702_s27 = sshll.u32 %s887_s21, 4  ;;  %s360_s12 = scalar_lea.vmem %s878_s3, %s887_s21 }
  0x10   : > { %s346_s30 = scalar_lea.vmem %s876_s1, %s702_s27  ;;  %s354_s9 = scalar_lea.vmem %s877_s2, %s702_s27  ;;  %v399_v14 = vld [vmem:[%s360_s12] sm:$0x1] }
  0x11   : > { %v752_v3 = vld [vmem:[%s346_s30] sm:$0xff]   ;;  %v754_v5 = vld [vmem:[%s346_s30 + $0x8] sm:$0xff]   ;;  %s366_s15 = scalar_lea.vmem %s879_s4, %s887_s21  ;;  %v400_v16 = vunpack.c.l.bf16 %v399_v14  ;;  %s691_s16 = sshll.u32 %s887_s21, 1 }
  0x12   : > { %v753_v4 = vld [vmem:[%s354_s9] sm:$0xff]   ;;  %711 = vmatpush3.bf16.msra.mxu0 %v752_v3  ;;  %v755_v6 = vld [vmem:[%s354_s9 + $0x8] sm:$0xff]   ;;  %s373_s19 = scalar_lea.vmem %s880_s5, %s691_s16  ;;  %s380_s26 = scalar_lea.vmem %s881_s6, %s691_s16 }
  0x13   : > { %719 = vmatpush3.bf16.msra.mxu1 %v753_v4  ;;  %712 = vmatprep.subr.bf16.mxu0 %v784_v1  ;;  %v757_v7 = vpop.eup %756  ;;  %v463_v15 = vld [vmem:[%s366_s15] sm:$0x1]  ;;  %v404_v19 = vrot.slane %v400_v16, %v403_v17 }
  0x14   : > { %720 = vmatprep.subr.bf16.mxu1 %v784_v1  ;;  %v386_v8 = vadd.f32 1.0, %v757_v7  ;;  %v464_v18 = vunpack.c.l.bf16 %v463_v15 }
  0x16   : > { %713 = vmatpush3.bf16.msra.mxu0 %v754_v5  ;;  %758 = vrcp.f32 %v386_v8  ;;  %v468_v20 = vrot.slane %v464_v18, %v403_v17 }
  0x17   : > { %721 = vmatpush3.bf16.msra.mxu1 %v755_v6 }
  0x20   : > { %v759_v9 = vpop.eup %758 }
  0x21   : > { %v389_v10 = vmul.f32 %v759_v9, %v382_v0 }
  0x23   : > { %v390_v11 = vpack.c.bf16 %v389_v10, %v389_v10 }
  0x25   : > { %715 = vmatmul.mubr.msk.bf16.vlgmr.msra.gmra.mrb[0].mxu0 %vm417_vm1, %v390_v11  ;;  %723 = vmatmul.mubr.msk.bf16.vlgmr.msra.gmra.mrb[0].mxu1 %vm417_vm1, %v390_v11 }
  0xf8   : > { %v455_v21 = vpop.f32.mrb[0].mxu0  ;;  %v515_v22 = vpop.f32.mrb[0].mxu1 }
  0xf9   : > { %v456_v23 = vadd.f32 %v455_v21, %v404_v19  ;;  %v516_v24 = vadd.f32 %v515_v22, %v468_v20  ;;  %v716_v25 = vpop.f32.mrb[1].mxu0  ;;  %v724_v26 = vpop.f32.mrb[1].mxu1 }
  0xfa   : > { %v458_v27 = vpop.f32.mrb[2].mxu0  ;;  %v518_v28 = vpop.f32.mrb[2].mxu1 }
  0xfb   : > { %462 = vst.msk [vmem:[%s373_s19] sm:$0x3] %vm461_vm2, %v456_v23  ;;  %521 = vst.msk [vmem:[%s380_s26] sm:$0x3] %vm461_vm2, %v516_v24  ;;  %v717_v29 = vpop.f32.mrb[3].mxu0  ;;  %v725_v30 = vpop.f32.mrb[3].mxu1 }
  0xfc PF: > { %s17_s23 = sadd.s32 1, %s782_s23   ;;  %s882_s21 = smov %s778_s22 }
  0xfd   : > { %p14_p5 = scmp.ge.s32.totalorder %s17_s23, 4   ;;  %s883_s22 = smov %s885_s24 }
  0xff   :  { %16 = sbr.rel (!%p14_p5) target bundleno = 2 (0x2), region = 91 }

// kernel: hunyuan_video_individual_token_refiner.12
= control target key start
LH: loop header
LB: loop body
LE: loop exit
PB: predicated region body
PF: predicated region fallthrough
CT: control target
= control target key end

     0   :  { %vm23_vm0 = vcmask 261120   ;;  %v179_v15 = vmov 0.0   ;;  %vm180_vm1 = vmmov 0   ;;  %v76_v34 = vlaneseq  ;;  %s243_s0 = inlined_call_operand.vmem [shape: f32[16,32], index: 0, kind: input, shape index: {}]   ;;  %s244_s3 = inlined_call_operand.vmem [shape: bf16[32,96], index: 3, kind: input, shape index: {}]   ;;  %s245_s1 = inlined_call_operand.vmem [shape: f32[1,32], index: 1, kind: input, shape index: {}]   ;;  %s246_s2 = inlined_call_operand.vmem [shape: f32[1,32], index: 2, kind: input, shape index: {}]   ;;  %s247_s4 = inlined_call_operand.vmem [shape: bf16[1,96], index: 4, kind: input, shape index: {}]   ;;  %s248_s5 = inlined_call_operand.vmem [shape: bf16[16,96], index: 5, kind: output, shape index: {}]  }
   0x1   :  { %v21_v0 = vld [vmem:[%s243_s0] sm:$0xff]  ;;  %v22_v1 = vld [vmem:[%s243_s0 + $0x8] sm:$0xff]  ;;  %163 = vmatprep.subr.bf16.mxu0 %v179_v15  ;;  %167 = vmatprep.mubr.msk.bf16.mxu0 %vm180_vm1, %v179_v15  ;;  %vm144_vm2 = vcmask 781312  }
   0x2   :  { %v24_v2 = vsel %vm23_vm0, %v21_v0, 0.0  ;;  %v27_v3 = vsel %vm23_vm0, %v22_v1, 0.0  ;;  %v173_v14 = vld [vmem:[%s244_s3] sm:$0xff]   ;;  %v174_v16 = vld [vmem:[%s244_s3 + $0x8] sm:$0xff]   ;;  %v77_v35 = vshrl.u32 %v76_v34, 7 }
   0x3   :  { %25 = vadd.xlane.f32.xlu0 %v24_v2  ;;  %164 = vmatpush3.bf16.msra.mxu0 %v173_v14  ;;  %v151_v25 = vld [vmem:[%s245_s1] ss:$0 sm:$0xff] }
   0x4   :  { %165 = vmatprep.subr.bf16.mxu0 %v179_v15  ;;  %v152_v29 = vld [vmem:[%s246_s2] ss:$0 sm:$0xff]  ;;  %v78_v38 = vsub.s32 0, %v77_v35 }
   0x5   :  { %v74_v36 = vld [vmem:[%s247_s4] sm:$0x1] }
   0x6   :  { %v75_v37 = vunpack.c.l.bf16 %v74_v36 }
   0x7   :  { %28 = vadd.xlane.f32.xlu0 %v27_v3  ;;  %166 = vmatpush3.bf16.msra.mxu0 %v174_v16 }
   0x8   :  { %v79_v39 = vrot.slane %v75_v37, %v78_v38 }
  0x90   :  { %v26_v4 = vpop.xlane.xlu0 %25 }
  0x91   :  { %v31_v5 = vmul.f32 0.03125, %v26_v4 }
  0x93   :  { %v33_v6 = vsub.f32 %v21_v0, %v31_v5 }
  0x94   :  { %v29_v7 = vpop.xlane.xlu0 %28 }
  0x95   :  { %v32_v8 = vmul.f32 0.03125, %v29_v7  ;;  %v35_v9 = vmul.f32 %v33_v6, %v33_v6 }
  0x97   :  { %v34_v10 = vsub.f32 %v22_v1, %v32_v8  ;;  %v37_v11 = vsel %vm23_vm0, %v35_v9, 0.0 }
  0x98   :  { %38 = vadd.xlane.f32.xlu1 %v37_v11 }
  0x99   :  { %v36_v12 = vmul.f32 %v34_v10, %v34_v10 }
  0x9b   :  { %v40_v13 = vsel %vm23_vm0, %v36_v12, 0.0 }
  0x9c   :  { %41 = vadd.xlane.f32.xlu1 %v40_v13 }
 0x125   :  { %v39_v17 = vpop.xlane.xlu1 %38 }
 0x126   :  { %v43_v18 = vmul.f32 0.03125, %v39_v17 }
 0x128   :  { %v45_v19 = vadd.f32 1e-06, %v43_v18 }
 0x129   :  { %v42_v20 = vpop.xlane.xlu1 %41 }
 0x12a   :  { %175 = vrsqrt.f32 %v45_v19  ;;  %v44_v21 = vmul.f32 0.03125, %v42_v20 }
 0x12c   :  { %v46_v22 = vadd.f32 1e-06, %v44_v21 }
 0x12e   :  { %177 = vrsqrt.f32 %v46_v22 }
 0x134   :  { %v176_v23 = vpop.eup %175 }
 0x135   :  { %v49_v24 = vmul.f32 %v176_v23, %v33_v6 }
 0x137   :  { %v58_v28 = vmul.f32 %v151_v25, %v49_v24 }
 0x138   :  { %v178_v26 = vpop.eup %177 }
 0x139   :  { %v50_v27 = vmul.f32 %v178_v26, %v34_v10  ;;  %v67_v31 = vadd.f32 %v152_v29, %v58_v28 }
 0x13b   :  { %v59_v30 = vmul.f32 %v151_v25, %v50_v27 }
 0x13d   :  { %v68_v32 = vadd.f32 %v152_v29, %v59_v30 }
 0x13f   :  { %v69_v33 = vpack.c.bf16 %v68_v32, %v67_v31 }
 0x141   :  { %168 = vmatmul.mubr.msk.bf16.vlgmr.msra.gmra.mrb[0].mxu0 %vm23_vm0, %v69_v33 }
 0x214   :  { %v129_v40 = vpop.f32.mrb[0].mxu0 }
 0x215   :  { %v130_v41 = vadd.f32 %v129_v40, %v79_v39  ;;  %v169_v42 = vpop.f32.mrb[1].mxu0 }
 0x216   :  { %v132_v43 = vpop.f32.mrb[2].mxu0 }
 0x217   :  { %v158_v44 = vpack.c.bf16 %v130_v41, %v130_v41  ;;  %v133_v45 = vadd.f32 %v132_v43, %v79_v39  ;;  %v170_v46 = vpop.f32.mrb[3].mxu0 }
 0x219   :  { %145 = vst.msk [vmem:[%s248_s5] sm:$0xf] %vm144_vm2, %v158_v44  ;;  %v159_v47 = vpack.c.bf16 %v133_v45, %v133_v45 }
 0x21b   :  { %146 = vst.msk [vmem:[%s248_s5 + $0x4] sm:$0xf] %vm144_vm2, %v159_v47 }

// kernel: hunyuan_video_individual_token_refiner.14
= control target key start
LH: loop header
LB: loop body
LE: loop exit
PB: predicated region body
PF: predicated region fallthrough
CT: control target
= control target key end

     0   :  { %s697_s18 = smov 0   ;;  %s699_s19 = smov 0   ;;  %s749_s0 = inlined_call_operand.vmem [shape: bf16[2,8,32], index: 0, kind: input, shape index: {}]   ;;  %s750_s1 = inlined_call_operand.vmem [shape: bf16[32,32], index: 1, kind: input, shape index: {}]   ;;  %s751_s2 = inlined_call_operand.vmem [shape: bf16[1,32], index: 2, kind: input, shape index: {}]   ;;  %s752_s3 = inlined_call_operand.vmem [shape: f32[2,1,32], index: 3, kind: input, shape index: {}]   ;;  %s753_s4 = inlined_call_operand.vmem [shape: f32[2,8,32], index: 4, kind: input, shape index: {}, may-alias: {4,5}]   ;;  %s754_s5 = inlined_call_operand.vmem [shape: f32[2,8,32], index: 5, kind: output, shape index: {}, may-alias: {4,5}]  }
   0x1   :  { %s701_s20 = smov 0  }
   0x2 LB: > { %s34_s21 = sadd.s32 1, %s659_s19  ;;  %p592_p0 = scmp.ge.s32.totalorder %s663_s20, 1  ;;  %s663_s20 = sphi %s701_s20, %s15_s20   ;;  %s659_s19 = sphi %s699_s19, %s756_s19   ;;  %s655_s18 = sphi %s697_s18, %s755_s18  }
   0x3   : > { %p36_p1 = scmp.ge.s32.totalorder %s34_s21, 2  ;;  %p263_p2 = scmp.lt.s32.totalorder %s663_s20, 3 }
   0x5   : > { %s758_s21 = smov (%p36_p1, %s34_s21), 0  ;;  %p264_p3 = pnand %p592_p0, %p263_p2 }
   0x6   : > { %v639_v0 = vld [vmem:[%s750_s1] sm:$0xff] (!%p264_p3)   ;;  %v665_v1 = vmov (!%p264_p3), 0.0   ;;  %v640_v2 = vld [vmem:[%s750_s1 + $0x8] sm:$0xff] (!%p264_p3)   ;;  %vm666_vm0 = vmmov (!%p264_p3), 0   ;;  %p319_p4 = scmp.lt.s32.totalorder (!%p264_p3), %s655_s18, 1  ;;  %vm363_vm1 = vcmask (!%p264_p3), 261120   ;;  %v435_v4 = vlaneseq (!%p264_p3) }
   0x7   : > { %267 = sbr.rel (%p264_p3) target bundleno = 247 (0xf7), region = 40  ;;  %605 = vmatprep.subr.bf16.mxu0 (!%p264_p3), %v665_v1  ;;  %609 = vmatprep.mubr.msk.bf16.mxu0 (!%p264_p3), %vm666_vm0, %v665_v1  ;;  %364 = vst.msk [vmem:[#allocation2] sm:$0xff] (!%p264_p3), %vm363_vm1, %v665_v1  ;;  %v433_v8 = vld [vmem:[%s751_s2] sm:$0x1] (!%p264_p3) }
   0x8   : > { %606 = vmatpush3.bf16.msra.mxu0 (!%p264_p3), %v639_v0  ;;  %v436_v6 = vshrl.u32 (!%p264_p3), %v435_v4, 7  ;;  %v434_v12 = vunpack.c.l.bf16 (!%p264_p3), %v433_v8 }
   0x9   : > { %607 = vmatprep.subr.bf16.mxu0 (!%p264_p3), %v665_v1 }
   0xa   : > { %v437_v13 = vsub.s32 (!%p264_p3), 0, %v436_v6 }
   0xc   : > { %608 = vmatpush3.bf16.msra.mxu0 (!%p264_p3), %v640_v2  ;;  %v438_v15 = vrot.slane (!%p264_p3), %v434_v12, %v437_v13 }
   0xe   : > { %s760_s18 = smov (!%p319_p4, %s655_s18), 1  ;;  %v365_v5 = vld [vmem:[#allocation2] sm:$0xff] }
   0xf   : > { %s593_s26 = sshll.u32 %s760_s18, 2  ;;  %s594_s7 = sshll.u32 %s760_s18, 3 }
  0x10   : > { %s325_s29 = scalar_lea.vmem %s749_s0, %s593_s26  ;;  %s343_s10 = scalar_lea.vmem %s752_s3, %s760_s18 }
  0x11   : > { %v366_v3 = vld [vmem:[%s325_s29] sm:$0xf]  ;;  %s350_s13 = scalar_lea.vmem %s753_s4, %s594_s7  ;;  %s357_s16 = scalar_lea.vmem %s754_s5, %s594_s7 }
  0x12   : > { %610 = vmatmul.mubr.msk.bf16.vlgmr.msra.gmra.mrb[0].mxu0 %vm363_vm1, %v366_v3  ;;  %v599_v16 = vld [vmem:[%s343_s10] ss:$0 sm:$0xff] }
  0x13   : > { %v440_v19 = vld [vmem:[%s350_s13] sm:$0xff] }
  0xe5   : > { %v421_v7 = vpop.f32.mrb[0].mxu0 }
  0xe6   : > { %v427_v9 = vadd.f32 %v421_v7, %v365_v5  ;;  %v611_v10 = vpop.f32.mrb[1].mxu0 }
  0xe7   : > { %v424_v11 = vpop.f32.mrb[2].mxu0 }
  0xe8   : > { %428 = vst.msk [vmem:[#allocation2] sm:$0xff] %vm363_vm1, %v427_v9  ;;  %v612_v14 = vpop.f32.mrb[3].mxu0 }
  0xef   : > { %v432_v17 = vld [vmem:[#allocation2] sm:$0xff] }
  0xf0   : > { %v439_v18 = vadd.f32 %v438_v15, %v432_v17 }
  0xf2   : > { %v448_v20 = vmul.f32 %v599_v16, %v439_v18 }
  0xf4   : > { %v449_v21 = vadd.f32 %v448_v20, %v440_v19 }
  0xf6   : > { %450 = vst.msk [vmem:[%s357_s16] sm:$0xff] %vm363_vm1, %v449_v21 }
  0xf7 PF: > { %s15_s20 = sadd.s32 1, %s663_s20   ;;  %s755_s18 = smov %s659_s19 }
  0xf8   : > { %p12_p5 = scmp.ge.s32.totalorder %s15_s20, 4   ;;  %s756_s19 = smov %s758_s21 }
  0xfa   :  { %14 = sbr.rel (!%p12_p5) target bundleno = 2 (0x2), region = 90 }

// kernel: hunyuan_video_individual_token_refiner.13
= control target key start
LH: loop header
LB: loop body
LE: loop exit
PB: predicated region body
PF: predicated region fallthrough
CT: control target
= control target key end

     0   :  { %s885_s18 = smov 0   ;;  %s887_s19 = smov 0   ;;  %s963_s0 = inlined_call_operand.vmem [shape: bf16[2,8,32], index: 0, kind: input, shape index: {}]   ;;  %s964_s1 = inlined_call_operand.vmem [shape: bf16[2,8,32], index: 1, kind: input, shape index: {}]   ;;  %s965_s2 = inlined_call_operand.vmem [shape: bf16[2,8,32], index: 2, kind: input, shape index: {}]   ;;  %s966_s3 = inlined_call_operand.vmem [shape: f32[2,8,1], index: 3, kind: input, shape index: {}]   ;;  %s967_s4 = inlined_call_operand.vmem [shape: f32[2,1,8], index: 4, kind: input, shape index: {}]   ;;  %s968_s5 = inlined_call_operand.vmem [shape: bf16[2,8,32], index: 5, kind: output, shape index: {}]  }
   0x1   :  { %s889_s20 = smov 0  }
   0x2 LB: > { %s27_s21 = sadd.s32 1, %s843_s19  ;;  %p733_p0 = scmp.ge.s32.totalorder %s847_s20, 1  ;;  %s847_s20 = sphi %s889_s20, %s15_s20   ;;  %s843_s19 = sphi %s887_s19, %s970_s19   ;;  %s839_s18 = sphi %s885_s18, %s969_s18  }
   0x3   : > { %p29_p1 = scmp.ge.s32.totalorder %s27_s21, 2  ;;  %p250_p2 = scmp.lt.s32.totalorder %s847_s20, 3 }
   0x5   : > { %s972_s21 = smov (%p29_p1, %s27_s21), 0  ;;  %p251_p3 = pnand %p733_p0, %p250_p2 }
   0x6   : > { %p303_p4 = scmp.lt.s32.totalorder (!%p251_p3), %s839_s18, 1  ;;  %v849_v0 = vmov (!%p251_p3), 0.0   ;;  %vm850_vm0 = vmmov (!%p251_p3), 0   ;;  %v851_v1 = vmov (!%p251_p3), 0   ;;  %vm362_vm1 = vcmask (!%p251_p3), 130048   ;;  %s852_s8 = smov (!%p251_p3), 112  }
   0x7   : > { %254 = sbr.rel (%p251_p3) target bundleno = 1118 (0x45e), region = 40  ;;  %759 = vmatprep.subr.bf16.mxu0 (!%p251_p3), %v849_v0  ;;  %761 = vmatprep.mubr.msk.bf16.mxu0 (!%p251_p3), %vm850_vm0, %v849_v0  ;;  %v354_v8 = vlaneseq (!%p251_p3)  ;;  %v853_v13 = vmov (!%p251_p3), -1e+30   ;;  %vm411_vm5 = vcmask (!%p251_p3), 64512   ;;  %vm425_vm6 = vcmask (!%p251_p3), 1043456  }
   0x8   : > { %813 = vset.pattern.permute.xlu0 (!%p251_p3), %v851_v1  ;;  %765 = vmatprep.subr.bf16.mxu1 (!%p251_p3), %v849_v0  ;;  %vm472_vm7 = vcmask (!%p251_p3), 125952   ;;  %vm602_vm8 = vcmask (!%p251_p3), 257152  }
   0x9   : > { %767 = vmatprep.mubr.msk.bf16.mxu1 (!%p251_p3), %vm850_vm0, %v849_v0  ;;  %v355_v11 = vand.u32 (!%p251_p3), 127, %v354_v8 }
   0xb   : > { %vm356_vm2 = vcmp.eq.s32.totalorder (!%p251_p3), %v355_v11, 0 }
   0xe   : > { %s974_s18 = smov (!%p303_p4, %s839_s18), 1 }
   0xf   : > { %s909_s22 = sshll.u32 %s974_s18, 2  ;;  %s737_s23 = sshll.u32 %s974_s18, 3 }
  0x10   : > { %s316_s26 = scalar_lea.vmem %s964_s1, %s909_s22  ;;  %s327_s29 = scalar_lea.vmem %s966_s3, %s737_s23 }
  0x11   : > { %v360_v2 = vld [vmem:[%s316_s26] sm:$0xf]  ;;  %s309_s7 = scalar_lea.vmem %s963_s0, %s909_s22  ;;  %s330_s11 = scalar_lea.vmem %s967_s4, %s974_s18 }
  0x12   : > { %v367_v3 = vsel %vm362_vm1, %v360_v2, 0  ;;  %v339_v4 = vld [vmem:[%s327_s29] sm:$0xff]  ;;  %v743_v6 = vcombine.low %v360_v2, %v360_v2  ;;  %s323_s14 = scalar_lea.vmem %s965_s2, %s909_s22  ;;  %s337_s17 = scalar_lea.vmem %s968_s5, %s909_s22 }
  0x13   : > { %760 = vmatpush3.bf16.xpose.msra.mxu0 %v367_v3  ;;  %343 = vperm.xlu0 %813, %v339_v4   ;;  %v359_v5 = vld [vmem:[%s309_s7] sm:$0xf]  ;;  %s854_s18 = smov 16  }
  0x14   : > { %777 = vmatprep.subr.bf16.mxu0 %v849_v0  ;;  %482 = vrot.lane.b32.xlu1 %v743_v6, %s852_s8  ;;  %v742_v7 = vcombine.low %v359_v5, %v359_v5  ;;  %v739_v9 = vld [vmem:[%s330_s11] ss:$0 sm:$0xff] }
  0x15   : > { %v361_v22 = vld [vmem:[%s323_s14] sm:$0xf] }
  0x16   : > { %v427_v23 = vsel %vm425_vm6, %v361_v22, 0  ;;  %v745_v24 = vcombine.low %v361_v22, %v361_v22 }
  0x17   : > { %766 = vmatpush3.bf16.msra.mxu1 %v427_v23 }
  0x18   : > { %477 = vrot.lane.b32.xlu1 %v742_v7, %s852_s8  ;;  %771 = vmatprep.subr.bf16.mxu1 %v849_v0 }
  0x1a   : > { %762 = vmatmul.mubr.msk.bf16.vlgmr.msra.gmra.mrb[0].mxu0 %vm362_vm1, %v359_v5 }
  0x1b   : > { %779 = vmatprep.mubr.msk.bf16.mxu0 %vm850_vm0, %v849_v0 }
  0x86   : > { %v483_v28 = vpop.permute.xlu1 %482 }
  0x87   : > { %v488_v30 = vsel %vm362_vm1, %v483_v28, 0 }
  0x8a   : > { %v478_v32 = vpop.permute.xlu1 %477 }
  0x92   : > { %v344_v10 = vpop.permute.xlu0 %343 }
  0x93   : > { %v352_v12 = vmul.f32 %v739_v9, %v344_v10 }
  0x95   : > { %vm353_vm3 = vcmp.gt.f32.partialorder %v352_v12, 0.5 }
  0x96   : > { %vm357_vm4 = vmor %vm353_vm3, %vm356_vm2 }
  0x97   : > { %v358_v14 = vsel %vm357_vm4, 0.0, %v853_v13 }
  0xed   : > { %v403_v15 = vpop.f32.mrb[0].mxu0 }
  0xee   : > { %v409_v16 = vmul.f32 0.25, %v403_v15  ;;  %v763_v17 = vpop.f32.mrb[1].mxu0 }
  0xef   : > { %v406_v18 = vpop.f32.mrb[2].mxu0 }
  0xf0   : > { %v764_v19 = vpop.f32.mrb[3].mxu0  ;;  %v410_v20 = vadd.f32 %v409_v16, %v358_v14 }
  0xf2   : > { %v412_v21 = vsel %vm411_vm5, %v410_v20, -inf }
  0xf3   : > { %413 = vmax.xlane.f32.xlu0 %v412_v21 }
 0x109   : > { %545 = vrot.lane.b32.xlu0 %v745_v24, %s852_s8 }
 0x180   : > { %v414_v25 = vpop.xlane.xlu0 %413 }
 0x181   : > { %v415_v26 = vsub.f32 %v410_v20, %v414_v25 }
 0x183   : > { %v416_v27 = vmul.f32 1.442695, %v415_v26 }
 0x184   : > { %v546_v44 = vpop.permute.xlu0 %545 }
 0x185   : > { %817 = vpow2.f32 %v416_v27  ;;  %v551_v45 = vsel %vm425_vm6, %v546_v44, 0 }
 0x186   : > { %778 = vmatpush3.bf16.msra.mxu0 %v551_v45 }
 0x18f   : > { %v818_v29 = vpop.eup %817 }
 0x190   : > { %v421_v31 = vpack.c.bf16 %v818_v29, %v818_v29  ;;  %v418_v52 = vsel %vm411_vm5, %v818_v29, 0.0 }
 0x192   : > { %768 = vmatmul.mubr.msk.bf16.vlgmr.msra.gmra.mrb[0].mxu1 %vm411_vm5, %v421_v31 }
 0x193   : > { %772 = vmatpush3.bf16.xpose.msra.mxu1 %v488_v30  ;;  %773 = vmatprep.mubr.msk.bf16.mxu1 %vm850_vm0, %v849_v0 }
 0x19a   : > { %774 = vmatmul.mubr.msk.bf16.vlgmr.msra.gmra.mrb[4].mxu1 %vm362_vm1, %v478_v32 }
 0x265   : > { %v463_v33 = vpop.f32.mrb[0].mxu1 }
 0x266   : > { %v769_v34 = vpop.f32.mrb[1].mxu1 }
 0x267   : > { %v466_v35 = vpop.f32.mrb[2].mxu1 }
 0x268   : > { %v770_v36 = vpop.f32.mrb[3].mxu1 }
 0x26d   : > { %v524_v37 = vpop.f32.mrb[4].mxu1 }
 0x26e   : > { %v530_v38 = vmul.f32 0.25, %v524_v37  ;;  %v775_v39 = vpop.f32.mrb[5].mxu1 }
 0x26f   : > { %v527_v40 = vpop.f32.mrb[6].mxu1 }
 0x270   : > { %v776_v41 = vpop.f32.mrb[7].mxu1  ;;  %v531_v42 = vadd.f32 %v530_v38, %v358_v14 }
 0x272   : > { %v532_v43 = vsel %vm411_vm5, %v531_v42, -inf }
 0x273   : > { %533 = vmax.xlane.f32.xlu1 %v532_v43 }
 0x300   : > { %v534_v46 = vpop.xlane.xlu1 %533 }
 0x301   : > { %v535_v47 = vsub.f32 %v531_v42, %v534_v46 }
 0x303   : > { %v536_v48 = vmul.f32 1.442695, %v535_v47 }
 0x305   : > { %819 = vpow2.f32 %v536_v48 }
 0x30f   : > { %v820_v49 = vpop.eup %819 }
 0x310   : > { %v538_v50 = vsel %vm411_vm5, %v820_v49, 0.0  ;;  %v541_v51 = vpack.c.bf16 %v820_v49, %v820_v49 }
 0x311   : > { %539 = vadd.xlane.f32.xlu1 %v538_v50 }
 0x312   : > { %780 = vmatmul.mubr.msk.bf16.vlgmr.msra.gmra.mrb[4].mxu0 %vm411_vm5, %v541_v51 }
 0x315   : > { %419 = vadd.xlane.f32.xlu1 %v418_v52 }
 0x39e   : > { %v540_v53 = vpop.xlane.xlu1 %539 }
 0x3a2   : > { %v420_v54 = vpop.xlane.xlu1 %419 }
 0x3a3   : > { %821 = vrcp.f32 %v420_v54 }
 0x3a4   : > { %823 = vrcp.f32 %v540_v53 }
 0x3ad   : > { %v822_v55 = vpop.eup %821 }
 0x3ae   : > { %v470_v56 = vmul.f32 %v822_v55, %v463_v33  ;;  %v824_v58 = vpop.eup %823 }
 0x3b0   : > { %v471_v57 = vpack.c.bf16 %v470_v56, %v470_v56 }
 0x3b2   : > { %473 = vst.msk [vmem:[%s337_s17] sm:$0xf] %vm472_vm7, %v471_v57 }
 0x3e5   : > { %v587_v59 = vpop.f32.mrb[4].mxu0 }
 0x3e6   : > { %v594_v60 = vmul.f32 %v824_v58, %v587_v59  ;;  %v781_v61 = vpop.f32.mrb[5].mxu0 }
 0x3e7   : > { %v590_v62 = vpop.f32.mrb[6].mxu0 }
 0x3e8   : > { %v750_v63 = vpack.c.bf16 %v594_v60, %v594_v60  ;;  %v782_v0 = vpop.f32.mrb[7].mxu0 }
 0x3ea   : > { %599 = vrot.lane.b32.xlu1 %v750_v63, %s854_s18 }
 0x45c   : > { %v600_v1 = vpop.permute.xlu1 %599 }
 0x45d   : > { %603 = vst.msk [vmem:[%s337_s17] sm:$0xf] %vm602_vm8, %v600_v1 }
 0x45e PF: > { %s15_s20 = sadd.s32 1, %s847_s20   ;;  %s969_s18 = smov %s843_s19 }
 0x45f   : > { %p12_p5 = scmp.ge.s32.totalorder %s15_s20, 4   ;;  %s970_s19 = smov %s972_s21 }
 0x461   :  { %14 = sbr.rel (!%p12_p5) target bundleno = 2 (0x2), region = 82 }

// kernel: hunyuan_video_individual_token_refiner.15
= control target key start
LH: loop header
LB: loop body
LE: loop exit
PB: predicated region body
PF: predicated region fallthrough
CT: control target
= control target key end

     0   :  { %vm23_vm0 = vcmask 261120   ;;  %v207_v15 = vmov 0.0   ;;  %vm208_vm1 = vmmov 0   ;;  %v76_v34 = vlaneseq  ;;  %s268_s0 = inlined_call_operand.vmem [shape: f32[16,32], index: 0, kind: input, shape index: {}]   ;;  %s269_s3 = inlined_call_operand.vmem [shape: bf16[32,128], index: 3, kind: input, shape index: {}]   ;;  %s270_s1 = inlined_call_operand.vmem [shape: f32[1,32], index: 1, kind: input, shape index: {}]   ;;  %s271_s2 = inlined_call_operand.vmem [shape: f32[1,32], index: 2, kind: input, shape index: {}]   ;;  %s272_s4 = inlined_call_operand.vmem [shape: bf16[1,128], index: 4, kind: input, shape index: {}]   ;;  %s273_s5 = inlined_call_operand.vmem [shape: bf16[16,128], index: 5, kind: output, shape index: {}]  }
   0x1   :  { %v21_v0 = vld [vmem:[%s268_s0] sm:$0xff]  ;;  %v22_v1 = vld [vmem:[%s268_s0 + $0x8] sm:$0xff]  ;;  %183 = vmatprep.subr.bf16.mxu0 %v207_v15  ;;  %187 = vmatprep.mubr.msk.bf16.mxu0 %vm208_vm1, %v207_v15 }
   0x2   :  { %v24_v2 = vsel %vm23_vm0, %v21_v0, 0.0  ;;  %v27_v3 = vsel %vm23_vm0, %v22_v1, 0.0  ;;  %v193_v14 = vld [vmem:[%s269_s3] sm:$0xff]   ;;  %v194_v16 = vld [vmem:[%s269_s3 + $0x8] sm:$0xff]   ;;  %v77_v35 = vshrl.u32 %v76_v34, 7 }
   0x3   :  { %25 = vadd.xlane.f32.xlu0 %v24_v2  ;;  %184 = vmatpush3.bf16.msra.mxu0 %v193_v14  ;;  %v164_v25 = vld [vmem:[%s270_s1] ss:$0 sm:$0xff] }
   0x4   :  { %185 = vmatprep.subr.bf16.mxu0 %v207_v15  ;;  %v165_v29 = vld [vmem:[%s271_s2] ss:$0 sm:$0xff]  ;;  %v78_v38 = vsub.s32 0, %v77_v35 }
   0x5   :  { %v74_v36 = vld [vmem:[%s272_s4] sm:$0x1] }
   0x6   :  { %v75_v37 = vunpack.c.l.bf16 %v74_v36 }
   0x7   :  { %28 = vadd.xlane.f32.xlu0 %v27_v3  ;;  %186 = vmatpush3.bf16.msra.mxu0 %v194_v16 }
   0x8   :  { %v79_v39 = vrot.slane %v75_v37, %v78_v38 }
  0x90   :  { %v26_v4 = vpop.xlane.xlu0 %25 }
  0x91   :  { %v31_v5 = vmul.f32 0.03125, %v26_v4 }
  0x93   :  { %v33_v6 = vsub.f32 %v21_v0, %v31_v5 }
  0x94   :  { %v29_v7 = vpop.xlane.xlu0 %28 }
  0x95   :  { %v32_v8 = vmul.f32 0.03125, %v29_v7  ;;  %v35_v9 = vmul.f32 %v33_v6, %v33_v6 }
  0x97   :  { %v34_v10 = vsub.f32 %v22_v1, %v32_v8  ;;  %v37_v11 = vsel %vm23_vm0, %v35_v9, 0.0 }
  0x98   :  { %38 = vadd.xlane.f32.xlu1 %v37_v11 }
  0x99   :  { %v36_v12 = vmul.f32 %v34_v10, %v34_v10 }
  0x9b   :  { %v40_v13 = vsel %vm23_vm0, %v36_v12, 0.0 }
  0x9c   :  { %41 = vadd.xlane.f32.xlu1 %v40_v13 }
 0x125   :  { %v39_v17 = vpop.xlane.xlu1 %38 }
 0x126   :  { %v43_v18 = vmul.f32 0.03125, %v39_v17 }
 0x128   :  { %v45_v19 = vadd.f32 1e-06, %v43_v18 }
 0x129   :  { %v42_v20 = vpop.xlane.xlu1 %41 }
 0x12a   :  { %195 = vrsqrt.f32 %v45_v19  ;;  %v44_v21 = vmul.f32 0.03125, %v42_v20 }
 0x12c   :  { %v46_v22 = vadd.f32 1e-06, %v44_v21 }
 0x12e   :  { %197 = vrsqrt.f32 %v46_v22 }
 0x134   :  { %v196_v23 = vpop.eup %195 }
 0x135   :  { %v49_v24 = vmul.f32 %v196_v23, %v33_v6 }
 0x137   :  { %v58_v28 = vmul.f32 %v164_v25, %v49_v24 }
 0x138   :  { %v198_v26 = vpop.eup %197 }
 0x139   :  { %v50_v27 = vmul.f32 %v198_v26, %v34_v10  ;;  %v67_v31 = vadd.f32 %v165_v29, %v58_v28 }
 0x13b   :  { %v59_v30 = vmul.f32 %v164_v25, %v50_v27 }
 0x13d   :  { %v68_v32 = vadd.f32 %v165_v29, %v59_v30 }
 0x13f   :  { %v69_v33 = vpack.c.bf16 %v68_v32, %v67_v31 }
 0x141   :  { %188 = vmatmul.mubr.msk.bf16.vlgmr.msra.gmra.mrb[0].mxu0 %vm23_vm0, %v69_v33 }
 0x214   :  { %v129_v40 = vpop.f32.mrb[0].mxu0 }
 0x215   :  { %v130_v41 = vadd.f32 %v129_v40, %v79_v39  ;;  %v189_v42 = vpop.f32.mrb[1].mxu0 }
 0x216   :  { %v132_v43 = vpop.f32.mrb[2].mxu0 }
 0x217   :  { %v169_v44 = vmul.f32 -1.442695, %v130_v41  ;;  %v133_v45 = vadd.f32 %v132_v43, %v79_v39  ;;  %v190_v46 = vpop.f32.mrb[3].mxu0 }
 0x219   :  { %199 = vpow2.f32 %v169_v44  ;;  %v170_v47 = vmul.f32 -1.442695, %v133_v45 }
 0x21b   :  { %201 = vpow2.f32 %v170_v47 }
 0x223   :  { %v200_v48 = vpop.eup %199 }
 0x224   :  { %v142_v49 = vadd.f32 1.0, %v200_v48 }
 0x225   :  { %v202_v50 = vpop.eup %201 }
 0x226   :  { %203 = vrcp.f32 %v142_v49  ;;  %v143_v51 = vadd.f32 1.0, %v202_v50 }
 0x228   :  { %205 = vrcp.f32 %v143_v51 }
 0x230   :  { %v204_v52 = vpop.eup %203 }
 0x231   :  { %v148_v54 = vmul.f32 %v204_v52, %v130_v41 }
 0x232   :  { %v206_v53 = vpop.eup %205 }
 0x233   :  { %v149_v55 = vmul.f32 %v206_v53, %v133_v45 }
 0x235   :  { %v178_v56 = vpack.c.bf16 %v149_v55, %v148_v54 }
 0x237   :  { %179 = vst [vmem:[%s273_s5] sm:$0xff] %v178_v56  }

// kernel: hunyuan_video_individual_token_refiner.16
= control target key start
LH: loop header
LB: loop body
LE: loop exit
PB: predicated region body
PF: predicated region fallthrough
CT: control target
= control target key end

     0   :  { %s771_s18 = smov 0   ;;  %s773_s19 = smov 0   ;;  %s849_s0 = inlined_call_operand.vmem [shape: bf16[2,8,128], index: 0, kind: input, shape index: {}]   ;;  %s850_s1 = inlined_call_operand.vmem [shape: bf16[128,32], index: 1, kind: input, shape index: {}]   ;;  %s851_s2 = inlined_call_operand.vmem [shape: bf16[1,32], index: 2, kind: input, shape index: {}]   ;;  %s852_s3 = inlined_call_operand.vmem [shape: f32[2,1,32], index: 3, kind: input, shape index: {}]   ;;  %s853_s4 = inlined_call_operand.vmem [shape: f32[2,8,32], index: 4, kind: input, shape index: {}, may-alias: {4,5}]   ;;  %s854_s5 = inlined_call_operand.vmem [shape: f32[2,8,32], index: 5, kind: output, shape index: {}, may-alias: {4,5}]  }
   0x1   :  { %s775_s20 = smov 0  }
   0x2 LB: > { %s34_s21 = sadd.s32 1, %s733_s19  ;;  %p637_p0 = scmp.ge.s32.totalorder %s737_s20, 1  ;;  %s737_s20 = sphi %s775_s20, %s15_s20   ;;  %s733_s19 = sphi %s773_s19, %s856_s19   ;;  %s729_s18 = sphi %s771_s18, %s855_s18  }
   0x3   : > { %p36_p1 = scmp.ge.s32.totalorder %s34_s21, 2  ;;  %p263_p2 = scmp.lt.s32.totalorder %s737_s20, 3 }
   0x5   : > { %s858_s21 = smov (%p36_p1, %s34_s21), 0  ;;  %p264_p3 = pnand %p637_p0, %p263_p2 }
   0x6   : > { %v707_v0 = vld [vmem:[%s850_s1] sm:$0xff] (!%p264_p3)   ;;  %v739_v1 = vmov (!%p264_p3), 0.0   ;;  %v708_v2 = vld [vmem:[%s850_s1 + $0x8] sm:$0xff] (!%p264_p3)   ;;  %vm740_vm0 = vmmov (!%p264_p3), 0   ;;  %vm363_vm1 = vcmask (!%p264_p3), 261120   ;;  %v709_v3 = vld [vmem:[%s850_s1 + $0x10] sm:$0xff] (!%p264_p3)   ;;  %v480_v10 = vlaneseq (!%p264_p3) }
   0x7   : > { %267 = sbr.rel (%p264_p3) target bundleno = 268 (0x10c), region = 40  ;;  %661 = vmatprep.subr.bf16.mxu0 (!%p264_p3), %v739_v1  ;;  %677 = vmatprep.mubr.msk.bf16.mxu0 (!%p264_p3), %vm740_vm0, %v739_v1  ;;  %364 = vst.msk [vmem:[#allocation2] sm:$0xff] (!%p264_p3), %vm363_vm1, %v739_v1  ;;  %v710_v4 = vld [vmem:[%s850_s1 + $0x18] sm:$0xff] (!%p264_p3)   ;;  %v711_v5 = vld [vmem:[%s850_s1 + $0x20] sm:$0xff] (!%p264_p3)   ;;  %p319_p4 = scmp.lt.s32.totalorder (!%p264_p3), %s729_s18, 1  ;;  %v712_v6 = vld [vmem:[%s850_s1 + $0x28] sm:$0xff] (!%p264_p3)  }
   0x8   : > { %662 = vmatpush3.bf16.msra.mxu0 (!%p264_p3), %v707_v0  ;;  %v713_v7 = vld [vmem:[%s850_s1 + $0x30] sm:$0xff] (!%p264_p3)   ;;  %v714_v8 = vld [vmem:[%s850_s1 + $0x38] sm:$0xff] (!%p264_p3)   ;;  %v481_v12 = vshrl.u32 (!%p264_p3), %v480_v10, 7  ;;  %v478_v14 = vld [vmem:[%s851_s2] sm:$0x1] (!%p264_p3) }
   0x9   : > { %663 = vmatprep.subr.bf16.mxu0 (!%p264_p3), %v739_v1  ;;  %v479_v18 = vunpack.c.l.bf16 (!%p264_p3), %v478_v14 }
   0xa   : > { %v482_v19 = vsub.s32 (!%p264_p3), 0, %v481_v12 }
   0xc   : > { %664 = vmatpush3.bf16.msra.mxu0 (!%p264_p3), %v708_v2  ;;  %v483_v21 = vrot.slane (!%p264_p3), %v479_v18, %v482_v19 }
   0xd   : > { %665 = vmatprep.subr.bf16.mxu0 (!%p264_p3), %v739_v1 }
   0xe   : > { %s860_s18 = smov (!%p319_p4, %s729_s18), 1  ;;  %v365_v11 = vld [vmem:[#allocation2] sm:$0xff] }
   0xf   : > { %s638_s11 = sshll.u32 %s860_s18, 2  ;;  %s639_s23 = sshll.u32 %s860_s18, 3 }
  0x10   : > { %666 = vmatpush3.bf16.msra.mxu0 %v709_v3  ;;  %s325_s16 = scalar_lea.vmem %s849_s0, %s638_s11  ;;  %s343_s26 = scalar_lea.vmem %s852_s3, %s860_s18 }
  0x11   : > { %667 = vmatprep.subr.bf16.mxu0 %v739_v1  ;;  %v366_v9 = vld [vmem:[%s325_s16] sm:$0xf]  ;;  %s350_s29 = scalar_lea.vmem %s853_s4, %s639_s23  ;;  %s357_s7 = scalar_lea.vmem %s854_s5, %s639_s23 }
  0x12   : > { %v649_v22 = vld [vmem:[%s343_s26] ss:$0 sm:$0xff] }
  0x13   : > { %v485_v25 = vld [vmem:[%s350_s29] sm:$0xff] }
  0x14   : > { %668 = vmatpush3.bf16.msra.mxu0 %v710_v4 }
  0x15   : > { %669 = vmatprep.subr.bf16.mxu0 %v739_v1 }
  0x18   : > { %670 = vmatpush3.bf16.msra.mxu0 %v711_v5 }
  0x19   : > { %671 = vmatprep.subr.bf16.mxu0 %v739_v1 }
  0x1c   : > { %672 = vmatpush3.bf16.msra.mxu0 %v712_v6 }
  0x1d   : > { %673 = vmatprep.subr.bf16.mxu0 %v739_v1 }
  0x20   : > { %674 = vmatpush3.bf16.msra.mxu0 %v713_v7 }
  0x21   : > { %675 = vmatprep.subr.bf16.mxu0 %v739_v1 }
  0x24   : > { %676 = vmatpush3.bf16.msra.mxu0 %v714_v8 }
  0x27   : > { %678 = vmatmul.mubr.bf16.vlgmr.msra.gmra.mrb[0].mxu0 %v366_v9 }
  0xfa   : > { %v465_v13 = vpop.f32.mrb[0].mxu0 }
  0xfb   : > { %v471_v15 = vadd.f32 %v465_v13, %v365_v11  ;;  %v679_v16 = vpop.f32.mrb[1].mxu0 }
  0xfc   : > { %v468_v17 = vpop.f32.mrb[2].mxu0 }
  0xfd   : > { %473 = vst.msk [vmem:[#allocation2] sm:$0xff] %vm363_vm1, %v471_v15  ;;  %v680_v20 = vpop.f32.mrb[3].mxu0 }
 0x104   : > { %v477_v23 = vld [vmem:[#allocation2] sm:$0xff] }
 0x105   : > { %v484_v24 = vadd.f32 %v483_v21, %v477_v23 }
 0x107   : > { %v493_v26 = vmul.f32 %v649_v22, %v484_v24 }
 0x109   : > { %v494_v27 = vadd.f32 %v493_v26, %v485_v25 }
 0x10b   : > { %495 = vst.msk [vmem:[%s357_s7] sm:$0xff] %vm363_vm1, %v494_v27 }
 0x10c PF: > { %s15_s20 = sadd.s32 1, %s737_s20   ;;  %s855_s18 = smov %s733_s19 }
 0x10d   : > { %p12_p5 = scmp.ge.s32.totalorder %s15_s20, 4   ;;  %s856_s19 = smov %s858_s21 }
 0x10f   :  { %14 = sbr.rel (!%p12_p5) target bundleno = 2 (0x2), region = 90 }

// kernel: hunyuan_video_individual_token_refiner.21
= control target key start
LH: loop header
LB: loop body
LE: loop exit
PB: predicated region body
PF: predicated region fallthrough
CT: control target
= control target key end

     0   :  { %10 = vsyncpa [#allocation4], 0  ;;  %s1148_s0 = inlined_call_operand.vmem [shape: bf16[2,8,128], index: 0, kind: input, shape index: {}]   ;;  %s1149_s1 = inlined_call_operand.vmem [shape: bf16[128,32], index: 1, kind: input, shape index: {}]   ;;  %s1150_s2 = inlined_call_operand.vmem [shape: bf16[1,32], index: 2, kind: input, shape index: {}]   ;;  %s1151_s3 = inlined_call_operand.vmem [shape: f32[2,1,32], index: 3, kind: input, shape index: {}]   ;;  %s1152_s4 = inlined_call_operand.hbm [shape: f32[2,8,32], index: 4, kind: input, shape index: {}, may-alias: {4,5}]   ;;  %s1153_s5 = inlined_call_operand.hbm [shape: f32[2,8,32], index: 5, kind: output, shape index: {}, may-alias: {4,5}]  }
   0x1   :  { %12 = vsyncpa [#allocation4 + $0x1], 0 }
   0x2   :  { %13 = vsyncpa [#allocation5], 0 }
   0x3   :  { %15 = vsyncpa [#allocation5 + $0x1], 0  ;;  %s931_s18 = smov 0   ;;  %s933_s19 = smov 0  }
   0x4   :  { %s935_s20 = smov 0   ;;  %s937_s21 = smov 0  }
   0x5   :  { %s939_s22 = smov 0   ;;  %s941_s23 = smov 0  }
   0x6 LB: > { %s657_s24 = sadd.s32 4294967295, %s895_s23   ;;  %s658_s25 = sadd.s32 4294967294, %s895_s23   ;;  %s895_s23 = sphi %s941_s23, %s21_s23   ;;  %s891_s22 = sphi %s939_s22, %s1169_s22   ;;  %s887_s21 = sphi %s937_s21, %s1168_s21   ;;  %s883_s20 = sphi %s935_s20, %s1167_s20   ;;  %s879_s19 = sphi %s933_s19, %s1166_s19   ;;  %s875_s18 = sphi %s931_s18, %s1165_s18  }
   0x7   : > { %s40_s26 = sadd.s32 1, %s891_s22  ;;  %s159_s27 = sadd.s32 1, %s883_s20 }
   0x8   : > { %p42_p0 = scmp.ge.s32.totalorder %s40_s26, 2  ;;  %p166_p1 = scmp.ne.s32.totalorder %s883_s20, %s879_s19 }
   0x9   : > { %p167_p2 = scmp.eq.s32.totalorder %s895_s23, 0  ;;  %p172_p3 = scmp.ne.s32.totalorder %s879_s19, %s875_s18 }
   0xa   : > { %s1171_s26 = smov (%p42_p0, %s40_s26), 0  ;;  %p173_p5 = scmp.eq.s32.totalorder %s657_s24, 0 }
   0xb   : > { %p972_p4 = por %p167_p2, %p166_p1  ;;  %s154_s29 = ssub.s32 %s891_s22, %s1171_s26 }
   0xc   : > { %p198_p6 = scmp.eq.s32.totalorder %s657_s24, 1  ;;  %p157_p7 = scmp.eq.s32.totalorder %s154_s29, 0 }
   0xd   : > { %p978_p8 = por %p173_p5, %p172_p3  ;;  %p204_p10 = scmp.eq.s32.totalorder %s658_s25, 1 }
   0xe   : > { %p982_p9 = por %p198_p6, %p166_p1  ;;  %p723_p13 = scmp.lt.s32.totalorder %s895_s23, 2 }
   0xf   : > { %s987_s7 = scalar_select %p157_p7, %s883_s20, %s159_s27  }
  0x10   : > { %s1157_s6 = scalar_select %p982_p9, 1, 0 }
  0x11   : > { %p989_p11 = por %p204_p10, %p172_p3  ;;  %s261_s9 = sand.u32 1, %s883_s20  }
  0x12   : > { %s663_s10 = sshll.u32 %s261_s9, 3  ;;  %s664_s11 = sshll.u32 %s891_s22, 7 }
  0x13   : > { %s1158_s8 = scalar_select %p989_p11, 1, 0 }
  0x14   : > { %s1000_s14 = scalar_lea.hbm %s1152_s4, %s664_s11  ;;  %s265_s15 = scalar_lea.vmem [#allocation3], %s663_s10 }
  0x15   : > { %s273_s16 = sshll.u32 %s265_s15, 4  ;;  %p1006_p0 = pnand %p723_p13, %p972_p4  ;;  %s1002_s16 = int_to_ptr.vmem [resolvable:$true] %s273_s16 }
  0x16   : > { %s262_s24 = scalar_lea.sflag [#allocation4], %s261_s9  ;;  %s783_s25 = scalar_lea.hbm %s1000_s14, 128 }
  0x17   : > { %p784_p3 = scmp.ne.s32.totalorder %s1000_s14, %s783_s25  ;;  %p785_p5 = pneg %p1006_p0 }
  0x18   : > { %s788_s28 = scalar_lea.hbm %s1152_s4, 256  ;;  %p789_p4 = scmp.lt.u32.totalorder %s1000_s14, %s1152_s4 }
  0x19   : > { %p786_p6 = pnand %p785_p5, %p784_p3  ;;  %p790_p10 = scmp.lt.u32.totalorder %s788_s28, %s783_s25 }
  0x1a   : > { %p792_p12 = scmp.lt.u32.totalorder %s783_s25, %s1000_s14 }
  0x1b   : > { %p787_p7 = pneg %p786_p6  ;;  %p791_p13 = por %p790_p10, %p789_p4 }
  0x1d   : > { %p793_p1 = por %p792_p12, %p791_p13 }
  0x1f   : > { %p794_p2 = pnand %p793_p1, %p787_p7 }
  0x21   : > { %797 = shalt.err (!%p794_p2)
}
  0x22   : > { %s798_s9 = scalar_lea.vmem %s1002_s16, 128  ;;  %s897_s12 = smov [#allocation3]  }
  0x23   : > { %p799_p3 = scmp.ne.s32.totalorder %s1002_s16, %s798_s9  ;;  %s803_s13 = sshll.u32 %s897_s12, 4  ;;  %s804_s13 = int_to_ptr.vmem [resolvable:$false] %s803_s13 }
  0x24   : > { %s805_s15 = scalar_lea.vmem %s804_s13, 256  ;;  %p806_p9 = scmp.lt.s32.totalorder %s1002_s16, %s804_s13 }
  0x25   : > { %p801_p6 = pnand %p799_p3, %p785_p5  ;;  %p807_p4 = scmp.lt.s32.totalorder %s805_s15, %s798_s9 }
  0x27   : > { %p802_p11 = pneg %p801_p6  ;;  %p808_p10 = por %p807_p4, %p806_p9 }
  0x29   : > { %p809_p12 = pnand %p808_p10, %p802_p11 }
  0x2b   : > { %812 = shalt.err (!%p809_p12)
}
  0x2c   : > { %718 = dma.hbm_to_vmem [thread:$0]  (!%p1006_p0), %s1000_s14, 128, %s1002_s16, %s262_s24  }
  0x2d   : > { %p1160_p1 = scmp.lt.s32.totalorder %s895_s23, 3  ;;  %p1161_p2 = scmp.ge.s32.totalorder %s895_s23, 1 }
  0x2f   : > { %p279_p5 = pnand %p1161_p2, %p1160_p1 }
  0x30   : > { %s1042_s25 = sand.u32 (!%p279_p5), 1, %s879_s19  }
  0x31   : > { %282 = sbr.rel (%p279_p5) target bundleno = 332 (0x14c), region = 40  ;;  %s666_s27 = sshll.u32 (!%p279_p5), %s1042_s25, 3 }
  0x32   : > { %s285_s29 = scalar_lea.sflag (!%p279_p5), [#allocation4], %s1042_s25  ;;  %s1048_s17 = scalar_lea.vmem (!%p279_p5), [#allocation3], %s666_s27 }
  0x38   : > { %866 = dma.done.wait (%p978_p8), %s285_s29, 128  }
  0x39   : > { %868 = vsyncadd (%p978_p8), %s285_s29, 4294967168  ;;  %vm369_vm0 = vcmask 261120   ;;  %v898_v0 = vmov 0.0   ;;  %vm899_vm1 = vmmov 0   ;;  %v775_v1 = vld [vmem:[%s1149_s1] sm:$0xff]   ;;  %v776_v2 = vld [vmem:[%s1149_s1 + $0x8] sm:$0xff]   ;;  %v486_v10 = vlaneseq }
  0x3a   : > { %691 = vmatprep.subr.bf16.mxu0 %v898_v0  ;;  %707 = vmatprep.mubr.msk.bf16.mxu0 %vm899_vm1, %v898_v0  ;;  %370 = vst.msk [vmem:[#allocation2] sm:$0xff] %vm369_vm0, %v898_v0  ;;  %v777_v3 = vld [vmem:[%s1149_s1 + $0x10] sm:$0xff]   ;;  %v778_v4 = vld [vmem:[%s1149_s1 + $0x18] sm:$0xff]   ;;  %v779_v5 = vld [vmem:[%s1149_s1 + $0x20] sm:$0xff]   ;;  %p339_p8 = scmp.lt.s32.totalorder %s887_s21, 1  ;;  %s338_s30 = scalar_lea.vmem [#allocation6], %s666_s27 }
  0x3b   : > { %692 = vmatpush3.bf16.msra.mxu0 %v775_v1  ;;  %v780_v6 = vld [vmem:[%s1149_s1 + $0x28] sm:$0xff]   ;;  %v781_v7 = vld [vmem:[%s1149_s1 + $0x30] sm:$0xff]   ;;  %v782_v8 = vld [vmem:[%s1149_s1 + $0x38] sm:$0xff]   ;;  %v487_v12 = vshrl.u32 %v486_v10, 7  ;;  %s517_s10 = sshll.u32 %s338_s30, 4  ;;  %p1162_p11 = scmp.ne.s32.totalorder %s1157_s6, 0  ;;  %s1100_s10 = int_to_ptr.vmem [resolvable:$true] %s517_s10 }
  0x3c   : > { %693 = vmatprep.subr.bf16.mxu0 %v898_v0  ;;  %s340_s14 = scalar_select %p339_p8, %s887_s21, 1  ;;  %v484_v14 = vld [vmem:[%s1150_s2] sm:$0x1]  ;;  %v491_v25 = vld [vmem:[%s1048_s17] sm:$0xff] }
  0x3d   : > { %v485_v19 = vunpack.c.l.bf16 %v484_v14  ;;  %v488_v20 = vsub.s32 0, %v487_v12  ;;  %s813_s17 = scalar_lea.vmem %s1100_s10, 128 }
  0x3e   : > { %s668_s28 = sshll.u32 %s340_s14, 2  ;;  %s363_s24 = scalar_lea.vmem %s1151_s3, %s340_s14 }
  0x3f   : > { %694 = vmatpush3.bf16.msra.mxu0 %v776_v2  ;;  %s345_s12 = scalar_lea.vmem %s1148_s0, %s668_s28  ;;  %v489_v21 = vrot.slane %v485_v19, %v488_v20  ;;  %v677_v22 = vld [vmem:[%s363_s24] ss:$0 sm:$0xff]  ;;  %s679_s28 = sshll.u32 %s887_s21, 7 }
  0x40   : > { %695 = vmatprep.subr.bf16.mxu0 %v898_v0  ;;  %v372_v9 = vld [vmem:[%s345_s12] sm:$0xf]  ;;  %s1098_s12 = scalar_lea.hbm %s1153_s5, %s679_s28  ;;  %s503_s14 = scalar_lea.sflag [#allocation5], %s1042_s25 }
  0x41   : > { %v371_v11 = vld [vmem:[#allocation2] sm:$0xff]  ;;  %p814_p9 = scmp.ne.s32.totalorder %s1100_s10, %s813_s17  ;;  %s900_s21 = smov [#allocation6]  }
  0x42   : > { %s817_s27 = sshll.u32 %s900_s21, 4  ;;  %s818_s27 = int_to_ptr.vmem [resolvable:$false] %s817_s27 }
  0x43   : > { %696 = vmatpush3.bf16.msra.mxu0 %v777_v3  ;;  %p815_p0 = pnand %p814_p9, %p1162_p11  ;;  %s819_s13 = scalar_lea.vmem %s818_s27, 256 }
  0x44   : > { %697 = vmatprep.subr.bf16.mxu0 %v898_v0  ;;  %p820_p13 = scmp.lt.s32.totalorder %s1100_s10, %s818_s27  ;;  %p821_p3 = scmp.lt.s32.totalorder %s819_s13, %s813_s17 }
  0x45   : > { %p816_p7 = pneg %p815_p0 }
  0x46   : > { %p822_p6 = por %p821_p3, %p820_p13 }
  0x47   : > { %698 = vmatpush3.bf16.msra.mxu0 %v778_v4 }
  0x48   : > { %699 = vmatprep.subr.bf16.mxu0 %v898_v0  ;;  %p823_p4 = pnand %p822_p6, %p816_p7 }
  0x4b   : > { %700 = vmatpush3.bf16.msra.mxu0 %v779_v5 }
  0x4c   : > { %701 = vmatprep.subr.bf16.mxu0 %v898_v0 }
  0x4f   : > { %702 = vmatpush3.bf16.msra.mxu0 %v780_v6 }
  0x50   : > { %703 = vmatprep.subr.bf16.mxu0 %v898_v0 }
  0x53   : > { %704 = vmatpush3.bf16.msra.mxu0 %v781_v7 }
  0x54   : > { %705 = vmatprep.subr.bf16.mxu0 %v898_v0 }
  0x57   : > { %706 = vmatpush3.bf16.msra.mxu0 %v782_v8 }
  0x5a   : > { %708 = vmatmul.mubr.bf16.vlgmr.msra.gmra.mrb[0].mxu0 %v372_v9 }
 0x12d   : > { %v471_v13 = vpop.f32.mrb[0].mxu0 }
 0x12e   : > { %v477_v15 = vadd.f32 %v471_v13, %v371_v11  ;;  %v709_v16 = vpop.f32.mrb[1].mxu0 }
 0x12f   : > { %v474_v17 = vpop.f32.mrb[2].mxu0 }
 0x130   : > { %479 = vst.msk [vmem:[#allocation2] sm:$0xff] %vm369_vm0, %v477_v15  ;;  %v710_v18 = vpop.f32.mrb[3].mxu0 }
 0x137   : > { %v483_v23 = vld [vmem:[#allocation2] sm:$0xff] }
 0x138   : > { %v490_v24 = vadd.f32 %v489_v21, %v483_v23 }
 0x13a   : > { %v499_v26 = vmul.f32 %v677_v22, %v490_v24 }
 0x13c   : > { %v500_v27 = vadd.f32 %v499_v26, %v491_v25 }
 0x13e   : > { %501 = vst.msk [vmem:[%s338_s30] sm:$0xff] %vm369_vm0, %v500_v27 }
 0x13f   : > { %826 = shalt.err (!%p823_p4)
}
 0x140   : > { %s827_s25 = scalar_lea.hbm %s1098_s12, 128  ;;  %s831_s16 = scalar_lea.hbm %s1153_s5, 256 }
 0x141   : > { %p828_p10 = scmp.ne.s32.totalorder %s1098_s12, %s827_s25  ;;  %p832_p2 = scmp.lt.u32.totalorder %s1098_s12, %s1153_s5 }
 0x142   : > { %p833_p5 = scmp.lt.u32.totalorder %s831_s16, %s827_s25  ;;  %p835_p9 = scmp.lt.u32.totalorder %s827_s25, %s1098_s12 }
 0x143   : > { %p829_p12 = pnand %p828_p10, %p1162_p11 }
 0x144   : > { %p834_p8 = por %p833_p5, %p832_p2 }
 0x145   : > { %p830_p1 = pneg %p829_p12 }
 0x146   : > { %p836_p0 = por %p835_p9, %p834_p8 }
 0x148   : > { %p837_p7 = pnand %p836_p0, %p830_p1 }
 0x14a   : > { %840 = shalt.err (!%p837_p7)
}
 0x14b   : > { %713 = dma.vmem_to_hbm [thread:$0]  (%p1162_p11), %s1100_s10, 128, %s1098_s12, %s503_s14  }
 0x14c PF: > { %s529_s30 = sand.u32 1, %s875_s18   ;;  %p1163_p13 = scmp.ne.s32.totalorder %s1158_s8, 0 }
 0x14d   : > { %p1164_p3 = scmp.ge.s32.totalorder %s895_s23, 2  ;;  %s530_s11 = scalar_lea.sflag [#allocation5], %s529_s30 }
 0x14f   : > { %p720_p6 = pnand %p1164_p3, %p1163_p13 }
 0x151   : > { %870 = dma.done.wait (!%p720_p6), %s530_s11, 128  }
 0x152   : > { %872 = vsyncadd (!%p720_p6), %s530_s11, 4294967168  ;;  %s21_s23 = sadd.s32 1, %s895_s23   ;;  %s1165_s18 = smov %s879_s19 }
 0x153   : > { %p18_p4 = scmp.ge.s32.totalorder %s21_s23, 4   ;;  %s1166_s19 = smov %s883_s20 }
 0x154   : > { %s1167_s20 = smov %s987_s7  ;;  %s1168_s21 = smov %s891_s22 }
 0x155   : > { %s1169_s22 = smov %s1171_s26  ;;  %20 = sbr.rel (!%p18_p4) target bundleno = 6 (0x6), region = 105 }
 0x15c   :  { %535 = vsyncpa [#allocation4], 1 }
 0x15d   :  { %537 = vsyncpa [#allocation4 + $0x1], 1 }
 0x15e   :  { %538 = vsyncpa [#allocation5], 1 }
 0x15f   :  { %540 = vsyncpa [#allocation5 + $0x1], 1 }

</bundles_post_ra>
